<compile_context>
chip_gen: v6e
topology: v6e:2x2x1
jax: 0.10.0
libtpu: 0.0.40
codegen_flags: <defaults>
</compile_context>

<pallas_src>
import functools

import jax
import jax.numpy as jnp
from jax.experimental import pallas as pl
from jax.experimental.pallas import tpu as pltpu

LANES = 128
H1, H2 = 24, 48


def _round_up(n, m):
    return (n + m - 1) // m * m


def _next_pow2(n):
    p = 1
    while p < n:
        p *= 2
    return p


def pack_params(params, observation_size):
    """Pack all weights/biases into one zero-padded, lane-dense (rows, 128) f32 slab.

    Layer-3 weights are stored as PACK lane-shifted copies so the kernel can emit a
    batch-compacted output without any in-kernel lane shuffling.  Call once, reuse.
    """
    obs = observation_size
    act = params["w3"].shape[1]
    assert act <= LANES and H1 <= LANES and H2 <= LANES

    obs_sec = _round_up(max(obs, 1), 8)             # sublane-aligned K for layer 1
    act_pad = max(8, _next_pow2(act))               # lane-group width (divides 128)
    act_pad = min(act_pad, LANES)
    pack = LANES // act_pad                         # batch rows packed per output row

    r_w1 = 0
    r_b1 = r_w1 + obs_sec
    r_w2 = r_b1 + 8
    r_b2 = r_w2 + LANES
    r_b3 = r_b2 + 8
    r_w3 = r_b3 + 8
    rows = r_w3 + pack * LANES

    w1 = jnp.asarray(params["w1"], jnp.float32)     # (obs, 24)
    b1 = jnp.asarray(params["b1"], jnp.float32).reshape(1, -1)
    w2 = jnp.asarray(params["w2"], jnp.float32)     # (24, 48)
    b2 = jnp.asarray(params["b2"], jnp.float32).reshape(1, -1)
    w3 = jnp.asarray(params["w3"], jnp.float32)     # (48, act)
    b3 = jnp.asarray(params["b3"], jnp.float32).reshape(1, -1)

    slab = jnp.zeros((rows, LANES), jnp.float32)    # zero padding is load-bearing
    slab = slab.at[r_w1:r_w1 + obs, :H1].set(w1)
    slab = slab.at[r_b1:r_b1 + 1, :H1].set(b1)
    slab = slab.at[r_w2:r_w2 + H1, :H2].set(w2)
    slab = slab.at[r_b2:r_b2 + 1, :H2].set(b2)
    for k in range(pack):
        c0 = k * act_pad
        slab = slab.at[r_b3:r_b3 + 1, c0:c0 + act].set(b3)
        rk = r_w3 + k * LANES
        slab = slab.at[rk:rk + H2, c0:c0 + act].set(w3)

    meta = dict(obs=obs, obs_sec=obs_sec, act=act, act_pad=act_pad, pack=pack,
                rows=rows, r_b1=r_b1, r_w2=r_w2, r_b2=r_b2, r_b3=r_b3, r_w3=r_w3)
    return slab, meta


def pg_mlp_kernel(x_ref, p_ref, out_ref, *, obs_sec, r_b1, r_w2, r_b2, r_b3,
                  r_w3, act_pad, pack, tbg):
    x = x_ref[...]                                        # (TB, obs_sec) f32

    # Layer 1: Linear(obs -> 24) + ReLU (N padded to 128 lanes; pad lanes stay 0).
    w1 = p_ref[pl.ds(0, obs_sec), :]                      # aligned (obs_sec, 128) view
    b1 = p_ref[pl.ds(r_b1, 1), :]
    h1 = jnp.maximum(jnp.dot(x, w1, preferred_element_type=jnp.float32) + b1, 0.0)

    # Layer 2: Linear(24 -> 48) + ReLU (K/N padded to 128; pad rows/lanes are 0).
    w2 = p_ref[pl.ds(r_w2, LANES), :]
    b2 = p_ref[pl.ds(r_b2, 1), :]
    h2 = jnp.maximum(jnp.dot(h1, w2, preferred_element_type=jnp.float32) + b2, 0.0)

    # Layer 3: Linear(48 -> act) with batch-compacted output.
    # Chunk k of the batch tile (rows [k*tbg, (k+1)*tbg)) is multiplied by the k-th
    # lane-shifted copy of w3, so its logits land in lanes [k*act_pad, k*act_pad+act).
    # Lane supports are disjoint, so the sum over chunks packs PACK batch rows per
    # 128-lane output row -> lane-dense, unmasked stores with ~PACK x less writeback.
    b3 = p_ref[pl.ds(r_b3, 1), :]                         # (1, 128), replicated per group
    acc = None
    for k in range(pack):
        w3k = p_ref[pl.ds(r_w3 + k * LANES, LANES), :]    # (128, 128)
        d = jnp.dot(h2[k * tbg:(k + 1) * tbg, :], w3k,
                    preferred_element_type=jnp.float32)   # (tbg, 128)
        acc = d if acc is None else acc + d
    out_ref[...] = (acc + b3).astype(out_ref.dtype)       # lane-dense (tbg, 128) store


def pg_agent_forward(x, slab, meta, *, tile_batch=4096):
    """x: (B, observation_size) float32; slab/meta: output of pack_params (pack once)."""
    x = jnp.asarray(x, jnp.float32)
    B = x.shape[0]
    obs, obs_sec = meta["obs"], meta["obs_sec"]
    act, act_pad, pack = meta["act"], meta["act_pad"], meta["pack"]
    assert x.shape[1] == obs

    # Zero-pad features to the 8-rounded K used by the kernel (aligned w1 slice).
    if obs_sec != obs:
        x = jnp.pad(x, ((0, 0), (0, obs_sec - obs)))

    # Batch tile: multiple of 8*pack so the compacted output tile (TB//pack, 128) is
    # sublane-aligned.  Footprint (x + out pipeline buffers + h1/h2 intermediates)
    # stays well under v5e's 16 MiB scoped default and v7x's 64 MiB physical VMEM.
    row_q = 8 * pack
    TB = min(_round_up(tile_batch, row_q), _round_up(B, row_q))
    B_pad = _round_up(B, TB)
    if B_pad != B:
        x = jnp.pad(x, ((0, B_pad - B), (0, 0)))
    TBG = TB // pack
    NT = B_pad // TB

    kernel = functools.partial(
        pg_mlp_kernel, obs_sec=obs_sec, r_b1=meta["r_b1"], r_w2=meta["r_w2"],
        r_b2=meta["r_b2"], r_b3=meta["r_b3"], r_w3=meta["r_w3"],
        act_pad=act_pad, pack=pack, tbg=TBG)

    out = pl.pallas_call(
        kernel,
        out_shape=jax.ShapeDtypeStruct((B_pad // pack, LANES), jnp.float32),
        grid_spec=pltpu.PrefetchScalarGridSpec(
            num_scalar_prefetch=0,
            grid=(NT,),
            in_specs=[
                pl.BlockSpec((TB, obs_sec), lambda i: (i, 0)),             # x tile
                pl.BlockSpec((meta["rows"], LANES), lambda i: (0, 0)),     # resident params
            ],
            out_specs=pl.BlockSpec((TBG, LANES), lambda i: (i, 0)),        # compacted logits
        ),
        compiler_params=pltpu.CompilerParams(
            dimension_semantics=("parallel",)),   # batch tiles independent; shards TCs
    )(x, slab)

    # Un-pack: out[i*TBG + j, k*act_pad + a] == logits[batch row i*TB + k*TBG + j, a].
    # Operates on a ~PACK x smaller array than the old (B_pad, 128) slab.
    o = out.reshape(NT, TBG, pack, act_pad).transpose(0, 2, 1, 3)
    return o.reshape(B_pad, act_pad)[:B, :act]


def init_params(key, observation_size, action_size):
    """Deterministic init mimicking PyTorch Linear default (U(-1/sqrt(fan_in), +))."""
    def linear(key, fan_in, fan_out):
        kw, kb = jax.random.split(key)
        bound = 1.0 / jnp.sqrt(float(fan_in))
        # Stored as (in, out)  (transposed vs. PyTorch's (out, in))
        w = jax.random.uniform(kw, (fan_in, fan_out), jnp.float32, -bound, bound)
        b = jax.random.uniform(kb, (1, fan_out), jnp.float32, -bound, bound)
        return w, b

    k1, k2, k3 = jax.random.split(key, 3)
    w1, b1 = linear(k1, observation_size, H1)
    w2, b2 = linear(k2, H1, H2)
    w3, b3 = linear(k3, H2, action_size)
    return {"w1": w1, "b1": b1, "w2": w2, "b2": b2, "w3": w3, "b3": b3}


if __name__ == "__main__":
    observation_size = 16
    action_size = 4
    batch = 300   # not a multiple of the batch tile -> exercises padding + unpack path

    key = jax.random.PRNGKey(0)
    kx, kp = jax.random.split(key)

    x = jax.random.normal(kx, (batch, observation_size), jnp.float32)
    params = init_params(kp, observation_size, action_size)

    # Pack once (hoisted out of the forward path); reuse across calls.
    slab, meta = pack_params(params, observation_size)

    # Pure-JAX reference of the same forward.
    h1 = jnp.maximum(x @ params["w1"] + params["b1"], 0.0)
    h2 = jnp.maximum(h1 @ params["w2"] + params["b2"], 0.0)
    ref = h2 @ params["w3"] + params["b3"]

    # Small tile so the demo runs a multi-step (pipelined) grid: grid=(3,).
    fwd = jax.jit(functools.partial(pg_agent_forward, meta=meta, tile_batch=128))
    logits = fwd(x, slab)
    jax.block_until_ready(logits)
    assert logits.shape == (batch, action_size)
    assert jnp.allclose(logits, ref, atol=1e-4, rtol=1e-4), "mismatch vs reference (tiled)"

    # Default (large) tile path: single grid step at this batch size.
    logits2 = pg_agent_forward(x, slab, meta)
    jax.block_until_ready(logits2)
    assert jnp.allclose(logits2, ref, atol=1e-4, rtol=1e-4), "mismatch vs reference (default tile)"

    print("KERNEL_OK")
</pallas_src>

<mosaic_0001>
module attributes {stable_mosaic.version = 11 : i64} {
  func.func @pg_mlp_kernel(%arg0: i32, %arg1: memref<128x16xf32, #tpu.memory_space<vmem>>, %arg2: memref<2216x128xf32, #tpu.memory_space<vmem>>, %arg3: memref<8x128xf32, #tpu.memory_space<vmem>>) attributes {dimension_semantics = [#tpu.dimension_semantics<parallel>], iteration_bounds = array<i64: 3>, scalar_prefetch = 0 : i64, scratch_operands = 0 : i64, tpu.core_type = #tpu.core_type<tc>, window_params = [{transform_indices = @transform_0, window_bounds = array<i64: 128, 16>}, {pipeline_mode = #tpu.pipeline_mode<synchronous>, transform_indices = @transform_1, window_bounds = array<i64: 2216, 128>}, {transform_indices = @transform_2, window_bounds = array<i64: 8, 128>}]} {
    %c0 = arith.constant 0 : index
    %c0_0 = arith.constant 0 : index
    %0 = vector.load %arg1[%c0, %c0_0] : memref<128x16xf32, #tpu.memory_space<vmem>>, vector<128x16xf32>
    %c0_1 = arith.constant 0 : index
    %c0_2 = arith.constant 0 : index
    %1 = vector.load %arg2[%c0_1, %c0_2] : memref<2216x128xf32, #tpu.memory_space<vmem>>, vector<16x128xf32>
    %c16 = arith.constant 16 : index
    %c0_3 = arith.constant 0 : index
    %2 = vector.load %arg2[%c16, %c0_3] : memref<2216x128xf32, #tpu.memory_space<vmem>>, vector<1x128xf32>
    %cst = arith.constant dense<0.000000e+00> : vector<128x128xf32>
    %3 = tpu.matmul %0, %1, %cst {dimension_numbers = #tpu.dot_dimension_numbers<[1], [0], [0], [1], [0, 0, 1, 1], [], []>} : vector<128x16xf32>, vector<16x128xf32>, vector<128x128xf32> -> vector<128x128xf32>
    %4 = vector.broadcast %2 : vector<1x128xf32> to vector<128x128xf32>
    %5 = arith.addf %3, %4 : vector<128x128xf32>
    %cst_4 = arith.constant 0.000000e+00 : f32
    %6 = vector.broadcast %cst_4 : f32 to vector<128x128xf32>
    %7 = arith.maximumf %5, %6 : vector<128x128xf32>
    %c24 = arith.constant 24 : index
    %c0_5 = arith.constant 0 : index
    %8 = vector.load %arg2[%c24, %c0_5] : memref<2216x128xf32, #tpu.memory_space<vmem>>, vector<128x128xf32>
    %c152 = arith.constant 152 : index
    %c0_6 = arith.constant 0 : index
    %9 = vector.load %arg2[%c152, %c0_6] : memref<2216x128xf32, #tpu.memory_space<vmem>>, vector<1x128xf32>
    %cst_7 = arith.constant dense<0.000000e+00> : vector<128x128xf32>
    %10 = tpu.matmul %7, %8, %cst_7 {dimension_numbers = #tpu.dot_dimension_numbers<[1], [0], [0], [1], [0, 0, 1, 1], [], []>} : vector<128x128xf32>, vector<128x128xf32>, vector<128x128xf32> -> vector<128x128xf32>
    %11 = vector.broadcast %9 : vector<1x128xf32> to vector<128x128xf32>
    %12 = arith.addf %10, %11 : vector<128x128xf32>
    %cst_8 = arith.constant 0.000000e+00 : f32
    %13 = vector.broadcast %cst_8 : f32 to vector<128x128xf32>
    %14 = arith.maximumf %12, %13 : vector<128x128xf32>
    %c160 = arith.constant 160 : index
    %c0_9 = arith.constant 0 : index
    %15 = vector.load %arg2[%c160, %c0_9] : memref<2216x128xf32, #tpu.memory_space<vmem>>, vector<1x128xf32>
    %c168 = arith.constant 168 : index
    %c0_10 = arith.constant 0 : index
    %16 = vector.load %arg2[%c168, %c0_10] : memref<2216x128xf32, #tpu.memory_space<vmem>>, vector<128x128xf32>
    %17 = vector.extract_strided_slice %14 {offsets = [0, 0], sizes = [8, 128], strides = [1, 1]} : vector<128x128xf32> to vector<8x128xf32>
    %cst_11 = arith.constant dense<0.000000e+00> : vector<8x128xf32>
    %18 = tpu.matmul %17, %16, %cst_11 {dimension_numbers = #tpu.dot_dimension_numbers<[1], [0], [0], [1], [0, 0, 1, 1], [], []>} : vector<8x128xf32>, vector<128x128xf32>, vector<8x128xf32> -> vector<8x128xf32>
    %c296 = arith.constant 296 : index
    %c0_12 = arith.constant 0 : index
    %19 = vector.load %arg2[%c296, %c0_12] : memref<2216x128xf32, #tpu.memory_space<vmem>>, vector<128x128xf32>
    %20 = vector.extract_strided_slice %14 {offsets = [8, 0], sizes = [8, 128], strides = [1, 1]} : vector<128x128xf32> to vector<8x128xf32>
    %cst_13 = arith.constant dense<0.000000e+00> : vector<8x128xf32>
    %21 = tpu.matmul %20, %19, %cst_13 {dimension_numbers = #tpu.dot_dimension_numbers<[1], [0], [0], [1], [0, 0, 1, 1], [], []>} : vector<8x128xf32>, vector<128x128xf32>, vector<8x128xf32> -> vector<8x128xf32>
    %22 = arith.addf %18, %21 : vector<8x128xf32>
    %c424 = arith.constant 424 : index
    %c0_14 = arith.constant 0 : index
    %23 = vector.load %arg2[%c424, %c0_14] : memref<2216x128xf32, #tpu.memory_space<vmem>>, vector<128x128xf32>
    %24 = vector.extract_strided_slice %14 {offsets = [16, 0], sizes = [8, 128], strides = [1, 1]} : vector<128x128xf32> to vector<8x128xf32>
    %cst_15 = arith.constant dense<0.000000e+00> : vector<8x128xf32>
    %25 = tpu.matmul %24, %23, %cst_15 {dimension_numbers = #tpu.dot_dimension_numbers<[1], [0], [0], [1], [0, 0, 1, 1], [], []>} : vector<8x128xf32>, vector<128x128xf32>, vector<8x128xf32> -> vector<8x128xf32>
    %26 = arith.addf %22, %25 : vector<8x128xf32>
    %c552 = arith.constant 552 : index
    %c0_16 = arith.constant 0 : index
    %27 = vector.load %arg2[%c552, %c0_16] : memref<2216x128xf32, #tpu.memory_space<vmem>>, vector<128x128xf32>
    %28 = vector.extract_strided_slice %14 {offsets = [24, 0], sizes = [8, 128], strides = [1, 1]} : vector<128x128xf32> to vector<8x128xf32>
    %cst_17 = arith.constant dense<0.000000e+00> : vector<8x128xf32>
    %29 = tpu.matmul %28, %27, %cst_17 {dimension_numbers = #tpu.dot_dimension_numbers<[1], [0], [0], [1], [0, 0, 1, 1], [], []>} : vector<8x128xf32>, vector<128x128xf32>, vector<8x128xf32> -> vector<8x128xf32>
    %30 = arith.addf %26, %29 : vector<8x128xf32>
    %c680 = arith.constant 680 : index
    %c0_18 = arith.constant 0 : index
    %31 = vector.load %arg2[%c680, %c0_18] : memref<2216x128xf32, #tpu.memory_space<vmem>>, vector<128x128xf32>
    %32 = vector.extract_strided_slice %14 {offsets = [32, 0], sizes = [8, 128], strides = [1, 1]} : vector<128x128xf32> to vector<8x128xf32>
    %cst_19 = arith.constant dense<0.000000e+00> : vector<8x128xf32>
    %33 = tpu.matmul %32, %31, %cst_19 {dimension_numbers = #tpu.dot_dimension_numbers<[1], [0], [0], [1], [0, 0, 1, 1], [], []>} : vector<8x128xf32>, vector<128x128xf32>, vector<8x128xf32> -> vector<8x128xf32>
    %34 = arith.addf %30, %33 : vector<8x128xf32>
    %c808 = arith.constant 808 : index
    %c0_20 = arith.constant 0 : index
    %35 = vector.load %arg2[%c808, %c0_20] : memref<2216x128xf32, #tpu.memory_space<vmem>>, vector<128x128xf32>
    %36 = vector.extract_strided_slice %14 {offsets = [40, 0], sizes = [8, 128], strides = [1, 1]} : vector<128x128xf32> to vector<8x128xf32>
    %cst_21 = arith.constant dense<0.000000e+00> : vector<8x128xf32>
    %37 = tpu.matmul %36, %35, %cst_21 {dimension_numbers = #tpu.dot_dimension_numbers<[1], [0], [0], [1], [0, 0, 1, 1], [], []>} : vector<8x128xf32>, vector<128x128xf32>, vector<8x128xf32> -> vector<8x128xf32>
    %38 = arith.addf %34, %37 : vector<8x128xf32>
    %c936 = arith.constant 936 : index
    %c0_22 = arith.constant 0 : index
    %39 = vector.load %arg2[%c936, %c0_22] : memref<2216x128xf32, #tpu.memory_space<vmem>>, vector<128x128xf32>
    %40 = vector.extract_strided_slice %14 {offsets = [48, 0], sizes = [8, 128], strides = [1, 1]} : vector<128x128xf32> to vector<8x128xf32>
    %cst_23 = arith.constant dense<0.000000e+00> : vector<8x128xf32>
    %41 = tpu.matmul %40, %39, %cst_23 {dimension_numbers = #tpu.dot_dimension_numbers<[1], [0], [0], [1], [0, 0, 1, 1], [], []>} : vector<8x128xf32>, vector<128x128xf32>, vector<8x128xf32> -> vector<8x128xf32>
    %42 = arith.addf %38, %41 : vector<8x128xf32>
    %c1064 = arith.constant 1064 : index
    %c0_24 = arith.constant 0 : index
    %43 = vector.load %arg2[%c1064, %c0_24] : memref<2216x128xf32, #tpu.memory_space<vmem>>, vector<128x128xf32>
    %44 = vector.extract_strided_slice %14 {offsets = [56, 0], sizes = [8, 128], strides = [1, 1]} : vector<128x128xf32> to vector<8x128xf32>
    %cst_25 = arith.constant dense<0.000000e+00> : vector<8x128xf32>
    %45 = tpu.matmul %44, %43, %cst_25 {dimension_numbers = #tpu.dot_dimension_numbers<[1], [0], [0], [1], [0, 0, 1, 1], [], []>} : vector<8x128xf32>, vector<128x128xf32>, vector<8x128xf32> -> vector<8x128xf32>
    %46 = arith.addf %42, %45 : vector<8x128xf32>
    %c1192 = arith.constant 1192 : index
    %c0_26 = arith.constant 0 : index
    %47 = vector.load %arg2[%c1192, %c0_26] : memref<2216x128xf32, #tpu.memory_space<vmem>>, vector<128x128xf32>
    %48 = vector.extract_strided_slice %14 {offsets = [64, 0], sizes = [8, 128], strides = [1, 1]} : vector<128x128xf32> to vector<8x128xf32>
    %cst_27 = arith.constant dense<0.000000e+00> : vector<8x128xf32>
    %49 = tpu.matmul %48, %47, %cst_27 {dimension_numbers = #tpu.dot_dimension_numbers<[1], [0], [0], [1], [0, 0, 1, 1], [], []>} : vector<8x128xf32>, vector<128x128xf32>, vector<8x128xf32> -> vector<8x128xf32>
    %50 = arith.addf %46, %49 : vector<8x128xf32>
    %c1320 = arith.constant 1320 : index
    %c0_28 = arith.constant 0 : index
    %51 = vector.load %arg2[%c1320, %c0_28] : memref<2216x128xf32, #tpu.memory_space<vmem>>, vector<128x128xf32>
    %52 = vector.extract_strided_slice %14 {offsets = [72, 0], sizes = [8, 128], strides = [1, 1]} : vector<128x128xf32> to vector<8x128xf32>
    %cst_29 = arith.constant dense<0.000000e+00> : vector<8x128xf32>
    %53 = tpu.matmul %52, %51, %cst_29 {dimension_numbers = #tpu.dot_dimension_numbers<[1], [0], [0], [1], [0, 0, 1, 1], [], []>} : vector<8x128xf32>, vector<128x128xf32>, vector<8x128xf32> -> vector<8x128xf32>
    %54 = arith.addf %50, %53 : vector<8x128xf32>
    %c1448 = arith.constant 1448 : index
    %c0_30 = arith.constant 0 : index
    %55 = vector.load %arg2[%c1448, %c0_30] : memref<2216x128xf32, #tpu.memory_space<vmem>>, vector<128x128xf32>
    %56 = vector.extract_strided_slice %14 {offsets = [80, 0], sizes = [8, 128], strides = [1, 1]} : vector<128x128xf32> to vector<8x128xf32>
    %cst_31 = arith.constant dense<0.000000e+00> : vector<8x128xf32>
    %57 = tpu.matmul %56, %55, %cst_31 {dimension_numbers = #tpu.dot_dimension_numbers<[1], [0], [0], [1], [0, 0, 1, 1], [], []>} : vector<8x128xf32>, vector<128x128xf32>, vector<8x128xf32> -> vector<8x128xf32>
    %58 = arith.addf %54, %57 : vector<8x128xf32>
    %c1576 = arith.constant 1576 : index
    %c0_32 = arith.constant 0 : index
    %59 = vector.load %arg2[%c1576, %c0_32] : memref<2216x128xf32, #tpu.memory_space<vmem>>, vector<128x128xf32>
    %60 = vector.extract_strided_slice %14 {offsets = [88, 0], sizes = [8, 128], strides = [1, 1]} : vector<128x128xf32> to vector<8x128xf32>
    %cst_33 = arith.constant dense<0.000000e+00> : vector<8x128xf32>
    %61 = tpu.matmul %60, %59, %cst_33 {dimension_numbers = #tpu.dot_dimension_numbers<[1], [0], [0], [1], [0, 0, 1, 1], [], []>} : vector<8x128xf32>, vector<128x128xf32>, vector<8x128xf32> -> vector<8x128xf32>
    %62 = arith.addf %58, %61 : vector<8x128xf32>
    %c1704 = arith.constant 1704 : index
    %c0_34 = arith.constant 0 : index
    %63 = vector.load %arg2[%c1704, %c0_34] : memref<2216x128xf32, #tpu.memory_space<vmem>>, vector<128x128xf32>
    %64 = vector.extract_strided_slice %14 {offsets = [96, 0], sizes = [8, 128], strides = [1, 1]} : vector<128x128xf32> to vector<8x128xf32>
    %cst_35 = arith.constant dense<0.000000e+00> : vector<8x128xf32>
    %65 = tpu.matmul %64, %63, %cst_35 {dimension_numbers = #tpu.dot_dimension_numbers<[1], [0], [0], [1], [0, 0, 1, 1], [], []>} : vector<8x128xf32>, vector<128x128xf32>, vector<8x128xf32> -> vector<8x128xf32>
    %66 = arith.addf %62, %65 : vector<8x128xf32>
    %c1832 = arith.constant 1832 : index
    %c0_36 = arith.constant 0 : index
    %67 = vector.load %arg2[%c1832, %c0_36] : memref<2216x128xf32, #tpu.memory_space<vmem>>, vector<128x128xf32>
    %68 = vector.extract_strided_slice %14 {offsets = [104, 0], sizes = [8, 128], strides = [1, 1]} : vector<128x128xf32> to vector<8x128xf32>
    %cst_37 = arith.constant dense<0.000000e+00> : vector<8x128xf32>
    %69 = tpu.matmul %68, %67, %cst_37 {dimension_numbers = #tpu.dot_dimension_numbers<[1], [0], [0], [1], [0, 0, 1, 1], [], []>} : vector<8x128xf32>, vector<128x128xf32>, vector<8x128xf32> -> vector<8x128xf32>
    %70 = arith.addf %66, %69 : vector<8x128xf32>
    %c1960 = arith.constant 1960 : index
    %c0_38 = arith.constant 0 : index
    %71 = vector.load %arg2[%c1960, %c0_38] : memref<2216x128xf32, #tpu.memory_space<vmem>>, vector<128x128xf32>
    %72 = vector.extract_strided_slice %14 {offsets = [112, 0], sizes = [8, 128], strides = [1, 1]} : vector<128x128xf32> to vector<8x128xf32>
    %cst_39 = arith.constant dense<0.000000e+00> : vector<8x128xf32>
    %73 = tpu.matmul %72, %71, %cst_39 {dimension_numbers = #tpu.dot_dimension_numbers<[1], [0], [0], [1], [0, 0, 1, 1], [], []>} : vector<8x128xf32>, vector<128x128xf32>, vector<8x128xf32> -> vector<8x128xf32>
    %74 = arith.addf %70, %73 : vector<8x128xf32>
    %c2088 = arith.constant 2088 : index
    %c0_40 = arith.constant 0 : index
    %75 = vector.load %arg2[%c2088, %c0_40] : memref<2216x128xf32, #tpu.memory_space<vmem>>, vector<128x128xf32>
    %76 = vector.extract_strided_slice %14 {offsets = [120, 0], sizes = [8, 128], strides = [1, 1]} : vector<128x128xf32> to vector<8x128xf32>
    %cst_41 = arith.constant dense<0.000000e+00> : vector<8x128xf32>
    %77 = tpu.matmul %76, %75, %cst_41 {dimension_numbers = #tpu.dot_dimension_numbers<[1], [0], [0], [1], [0, 0, 1, 1], [], []>} : vector<8x128xf32>, vector<128x128xf32>, vector<8x128xf32> -> vector<8x128xf32>
    %78 = arith.addf %74, %77 : vector<8x128xf32>
    %79 = vector.broadcast %15 : vector<1x128xf32> to vector<8x128xf32>
    %80 = arith.addf %78, %79 : vector<8x128xf32>
    %c0_42 = arith.constant 0 : index
    %c0_43 = arith.constant 0 : index
    %81 = vector.load %arg3[%c0_42, %c0_43] : memref<8x128xf32, #tpu.memory_space<vmem>>, vector<8x128xf32>
    tpu.vector_store %arg3[%c0_42, %c0_43], %80 {strides = array<i32>} : memref<8x128xf32, #tpu.memory_space<vmem>>, vector<8x128xf32>,
    return
  }
  func.func @transform_0(%arg0: i32) -> (i32, i32) {
    %c0_i32 = arith.constant 0 : i32
    %c0_i32_0 = arith.constant 0 : i32
    return %arg0, %c0_i32 : i32, i32
  }
  func.func @transform_1(%arg0: i32) -> (i32, i32) {
    %c0_i32 = arith.constant 0 : i32
    %c0_i32_0 = arith.constant 0 : i32
    %c0_i32_1 = arith.constant 0 : i32
    return %c0_i32, %c0_i32_0 : i32, i32
  }
  func.func @transform_2(%arg0: i32) -> (i32, i32) {
    %c0_i32 = arith.constant 0 : i32
    %c0_i32_0 = arith.constant 0 : i32
    return %arg0, %c0_i32 : i32, i32
  }
}

</mosaic_0001>

<bundles_post_ra>
// kernel: pg_agent_forward.1
= control target key start
LH: loop header
LB: loop body
LE: loop exit
PB: predicated region body
PF: predicated region fallthrough
CT: control target
= control target key end

     0   :  { %7 = vsyncpa [#allocation3], 0  ;;  %s3115_s9 = smov 0   ;;  %s3527_s0 = inlined_call_operand.vmem [shape: f32[384,16], index: 0, kind: input, shape index: {}]   ;;  %s3528_s1 = inlined_call_operand.hbm [shape: f32[2216,128], index: 1, kind: input, shape index: {}]   ;;  %s3529_s2 = inlined_call_operand.vmem [shape: f32[24,128], index: 2, kind: output, shape index: {}]  }
   0x1 LB: > { %s3121_s10 = sadd.s32 4294967295, %s3093_s9   ;;  %p2038_p0 = scmp.ge.s32.totalorder %s3093_s9, 1  ;;  %s3093_s9 = sphi %s3115_s9, %s13_s9  }
   0x2   : > { %p91_p1 = scmp.lt.s32.totalorder %s3093_s9, 4  ;;  %s3095_s11 = smov [#allocation2]  }
   0x3   : > { %s103_s12 = sshll.u32 %s3095_s11, 4  ;;  %p3041_p3 = scmp.eq.s32.totalorder %s3121_s10, 0  ;;  %s104_s12 = int_to_ptr.vmem [resolvable:$true] %s103_s12 }
   0x4   : > { %p3125_p2 = pnand %p2038_p0, %p91_p1  ;;  %s3068_s14 = scalar_lea.vmem %s104_s12, 35456 }
   0x5   : > { %p3069_p7 = scmp.ne.s32.totalorder %s104_s12, %s3068_s14  ;;  %p3076_p10 = scmp.lt.s32.totalorder %s104_s12, %s104_s12 }
   0x6   : > { %p3037_p4 = pneg %p3125_p2  ;;  %p3077_p11 = scmp.lt.s32.totalorder %s3068_s14, %s3068_s14 }
   0x8   : > { %p3038_p5 = pnand %p3041_p3, %p3037_p4  ;;  %p3078_p12 = por %p3077_p11, %p3076_p10 }
   0xa   : > { %p3059_p6 = pneg %p3038_p5 }
   0xc   : > { %p3071_p8 = pnand %p3069_p7, %p3059_p6 }
   0xe   : > { %p3072_p9 = pneg %p3071_p8 }
  0x10   : > { %p3079_p13 = pnand %p3078_p12, %p3072_p9 }
  0x12   : > { %3082 = shalt.err (!%p3079_p13)
}
  0x13   : > { %s3096_s15 = smov 128   ;;  %s3097_s16 = smov 8  }
  0x14   : > { %3040 = dma.hbm_to_vmem [thread:$0]  (!%p3038_p5), %s3528_s1, 35456, %s104_s12, [#allocation3], %s3096_s15, %s3096_s15, %s3097_s16  }
  0x15   : > { %128 = sbr.rel (%p3125_p2) target bundleno = 868 (0x364), region = 28 }
  0x1a   : > { %3088 = dma.done.wait (%p3041_p3), [#allocation3], 35456  }
  0x1b   : > { %3090 = vsyncadd (%p3041_p3), [#allocation3], 4294931840  ;;  %s2043_s19 = sshll.u32 %s3121_s10, 4  ;;  %vm182_vm0 = vcmask 130048   ;;  %v176_v0 = vld [vmem:[#allocation2 + $0x8] sm:$0xff]  ;;  %v175_v1 = vld [vmem:[#allocation2] sm:$0xff] }
  0x1c   : > { %p150_p0 = scmp.lt.s32.totalorder %s2043_s19, 47  ;;  %2389 = vmatprep.subr.mxu0 %v176_v0  ;;  %v407_v5 = vld [vmem:[#allocation2 + $0x90] sm:$0xff]  ;;  %v406_v6 = vld [vmem:[#allocation2 + $0x88] sm:$0xff]  ;;  %v405_v8 = vld [vmem:[#allocation2 + $0x80] sm:$0xff]  ;;  %v3098_v35 = vmov 0.0   ;;  %vm3099_vm1 = vmmov 0  }
  0x1d   : > { %2390 = vmatpush3.msra.mxu0 %v176_v0  ;;  %2417 = vmatprep.subr.mxu1 %v407_v5  ;;  %v404_v10 = vld [vmem:[#allocation2 + $0x78] sm:$0xff]  ;;  %v403_v12 = vld [vmem:[#allocation2 + $0x70] sm:$0xff]  ;;  %v402_v14 = vld [vmem:[#allocation2 + $0x68] sm:$0xff]  ;;  %p155_p1 = scmp.lt.s32.totalorder %s3121_s10, 2 }
  0x1e   : > { %s3532_s19 = smov (!%p150_p0, %s2043_s19), 47  ;;  %2391 = vmatprep.subr.mxu0 %v175_v1  ;;  %2418 = vmatpush3.msra.mxu1 %v407_v5  ;;  %v401_v16 = vld [vmem:[#allocation2 + $0x60] sm:$0xff]  ;;  %v400_v18 = vld [vmem:[#allocation2 + $0x58] sm:$0xff]  ;;  %v399_v20 = vld [vmem:[#allocation2 + $0x50] sm:$0xff] }
  0x1f   : > { %s2044_s20 = sshll.u32 %s3532_s19, 3  ;;  %2392 = vmatpush3.msra.mxu0 %v175_v1  ;;  %2419 = vmatprep.subr.mxu1 %v406_v6  ;;  %v398_v22 = vld [vmem:[#allocation2 + $0x48] sm:$0xff]  ;;  %v397_v24 = vld [vmem:[#allocation2 + $0x40] sm:$0xff]  ;;  %v396_v26 = vld [vmem:[#allocation2 + $0x38] sm:$0xff]  ;;  %s3534_s10 = smov (!%p155_p1, %s3121_s10), 2 }
  0x20   : > { %s3147_s23 = scalar_lea.vmem %s3527_s0, %s2044_s20  ;;  %2420 = vmatpush3.msra.mxu1 %v406_v6  ;;  %v395_v30 = vld [vmem:[#allocation2 + $0x30] sm:$0xff]  ;;  %v394_v31 = vld [vmem:[#allocation2 + $0x28] sm:$0xff]  ;;  %v393_v32 = vld [vmem:[#allocation2 + $0x20] sm:$0xff]  ;;  %2473 = vmatprep.subr.mxu0 %v3098_v35  ;;  %s2045_s24 = sshll.u32 %s3534_s10, 3 }
  0x21   : > { %v159_v2 = vld [vmem:[%s3147_s23] sm:$0xff]  ;;  %v160_v3 = vld [vmem:[%s3147_s23 + $0x8] sm:$0xff]  ;;  %v161_v4 = vld [vmem:[%s3147_s23 + $0x10] sm:$0xff]  ;;  %2421 = vmatprep.subr.mxu1 %v405_v8  ;;  %s158_s27 = scalar_lea.vmem %s3529_s2, %s2045_s24 }
  0x22   : > { %2393 = vmatprep.mubr.msk.f32.mxu0 %vm182_vm0, %v159_v2  ;;  %v162_v7 = vld [vmem:[%s3147_s23 + $0x18] sm:$0xff]  ;;  %v163_v9 = vld [vmem:[%s3147_s23 + $0x20] sm:$0xff]  ;;  %v164_v11 = vld [vmem:[%s3147_s23 + $0x28] sm:$0xff]  ;;  %2422 = vmatpush3.msra.mxu1 %v405_v8 }
  0x23   : > { %2394 = vmatmul.mubr.msk.f32.vlgmr.msra.gmra.mxu0 %vm182_vm0, %v160_v3  ;;  %v165_v13 = vld [vmem:[%s3147_s23 + $0x30] sm:$0xff]  ;;  %2423 = vmatprep.subr.mxu1 %v404_v10  ;;  %v166_v15 = vld [vmem:[%s3147_s23 + $0x38] sm:$0xff]  ;;  %v167_v17 = vld [vmem:[%s3147_s23 + $0x40] sm:$0xff] }
  0x24   : > { %2396 = vmatprep.mubr.msk.f32.mxu0 %vm182_vm0, %v161_v4  ;;  %2424 = vmatpush3.msra.mxu1 %v404_v10  ;;  %v168_v19 = vld [vmem:[%s3147_s23 + $0x48] sm:$0xff]  ;;  %v169_v21 = vld [vmem:[%s3147_s23 + $0x50] sm:$0xff]  ;;  %v170_v23 = vld [vmem:[%s3147_s23 + $0x58] sm:$0xff] }
  0x25   : > { %2425 = vmatprep.subr.mxu1 %v403_v12  ;;  %v171_v25 = vld [vmem:[%s3147_s23 + $0x60] sm:$0xff]  ;;  %v172_v27 = vld [vmem:[%s3147_s23 + $0x68] sm:$0xff]  ;;  %v173_v28 = vld [vmem:[%s3147_s23 + $0x70] sm:$0xff] }
  0x26   : > { %2426 = vmatpush3.msra.mxu1 %v403_v12  ;;  %v174_v29 = vld [vmem:[%s3147_s23 + $0x78] sm:$0xff]  ;;  %v606_v34 = vld [vmem:[#allocation2 + $0x1a0] sm:$0xff]  ;;  %v604_v37 = vld [vmem:[#allocation2 + $0x190] sm:$0xff] }
  0x27   : > { %2397 = vmatmul.mubr.msk.f32.gmra.mxu0 %vm182_vm0, %v162_v7  ;;  %2427 = vmatprep.subr.mxu1 %v402_v14  ;;  %v392_v33 = vld [vmem:[#allocation2 + $0x18] sm:$0xff]  ;;  %v603_v38 = vld [vmem:[#allocation2 + $0x188] sm:$0xff]  ;;  %v602_v39 = vld [vmem:[#allocation2 + $0x180] sm:$0xff] }
  0x28   : > { %2399 = vmatprep.mubr.msk.f32.mxu0 %vm182_vm0, %v163_v9  ;;  %2428 = vmatpush3.msra.mxu1 %v402_v14  ;;  %v605_v36 = vld [vmem:[#allocation2 + $0x198] sm:$0xff]  ;;  %v600_v41 = vld [vmem:[#allocation2 + $0x170] sm:$0xff]  ;;  %v599_v42 = vld [vmem:[#allocation2 + $0x168] sm:$0xff] }
  0x29   : > { %2429 = vmatprep.subr.mxu1 %v401_v16  ;;  %2474 = vmatpush3.msra.mxu0 %v606_v34  ;;  %v601_v40 = vld [vmem:[#allocation2 + $0x178] sm:$0xff]  ;;  %v598_v43 = vld [vmem:[#allocation2 + $0x160] sm:$0xff]  ;;  %v596_v45 = vld [vmem:[#allocation2 + $0x150] sm:$0xff] }
  0x2a   : > { %2430 = vmatpush3.msra.mxu1 %v401_v16  ;;  %2475 = vmatprep.subr.mxu0 %v3098_v35  ;;  %v597_v44 = vld [vmem:[#allocation2 + $0x158] sm:$0xff]  ;;  %v595_v46 = vld [vmem:[#allocation2 + $0x148] sm:$0xff]  ;;  %v594_v47 = vld [vmem:[#allocation2 + $0x140] sm:$0xff] }
  0x2b   : > { %2400 = vmatmul.mubr.msk.f32.gmra.mxu0 %vm182_vm0, %v164_v11  ;;  %2431 = vmatprep.subr.mxu1 %v400_v18  ;;  %v593_v48 = vld [vmem:[#allocation2 + $0x138] sm:$0xff]  ;;  %v3197_v49 = vld [vmem:[#allocation2 + $0x10] ss:$0 sm:$0xff]  ;;  %v590_v59 = vld [vmem:[#allocation2 + $0x120] sm:$0xff] }
  0x2c   : > { %2402 = vmatprep.mubr.msk.f32.mxu0 %vm182_vm0, %v165_v13  ;;  %2432 = vmatpush3.msra.mxu1 %v400_v18  ;;  %v589_v63 = vld [vmem:[#allocation2 + $0x118] sm:$0xff]  ;;  %v588_v3 = vld [vmem:[#allocation2 + $0x110] sm:$0xff]  ;;  %v587_v7 = vld [vmem:[#allocation2 + $0x108] sm:$0xff] }
  0x2d   : > { %2433 = vmatprep.subr.mxu1 %v399_v20  ;;  %2476 = vmatpush3.msra.mxu0 %v605_v36  ;;  %v586_v11 = vld [vmem:[#allocation2 + $0x100] sm:$0xff]  ;;  %v580_v36 = vld [vmem:[#allocation2 + $0xd0] sm:$0xff] }
  0x2e   : > { %2434 = vmatpush3.msra.mxu1 %v399_v20  ;;  %2477 = vmatprep.subr.mxu0 %v3098_v35 }
  0x2f   : > { %2403 = vmatmul.mubr.msk.f32.gmra.mxu0 %vm182_vm0, %v166_v15  ;;  %2435 = vmatprep.subr.mxu1 %v398_v22  ;;  %v585_v15 = vld [vmem:[#allocation2 + $0xf8] sm:$0xff] }
  0x30   : > { %2405 = vmatprep.mubr.msk.f32.mxu0 %vm182_vm0, %v167_v17  ;;  %2436 = vmatpush3.msra.mxu1 %v398_v22 }
  0x31   : > { %2437 = vmatprep.subr.mxu1 %v397_v24  ;;  %2478 = vmatpush3.msra.mxu0 %v604_v37 }
  0x32   : > { %2438 = vmatpush3.msra.mxu1 %v397_v24  ;;  %2479 = vmatprep.subr.mxu0 %v3098_v35 }
  0x33   : > { %2406 = vmatmul.mubr.msk.f32.gmra.mxu0 %vm182_vm0, %v168_v19  ;;  %2439 = vmatprep.subr.mxu1 %v396_v26  ;;  %v584_v19 = vld [vmem:[#allocation2 + $0xf0] sm:$0xff] }
  0x34   : > { %2408 = vmatprep.mubr.msk.f32.mxu0 %vm182_vm0, %v169_v21  ;;  %2440 = vmatpush3.msra.mxu1 %v396_v26 }
  0x35   : > { %2441 = vmatprep.subr.mxu1 %v395_v30  ;;  %2480 = vmatpush3.msra.mxu0 %v603_v38 }
  0x36   : > { %2442 = vmatpush3.msra.mxu1 %v395_v30  ;;  %2481 = vmatprep.subr.mxu0 %v3098_v35 }
  0x37   : > { %2409 = vmatmul.mubr.msk.f32.gmra.mxu0 %vm182_vm0, %v170_v23  ;;  %2443 = vmatprep.subr.mxu1 %v394_v31  ;;  %v583_v23 = vld [vmem:[#allocation2 + $0xe8] sm:$0xff] }
  0x38   : > { %2411 = vmatprep.mubr.msk.f32.mxu0 %vm182_vm0, %v171_v25  ;;  %2444 = vmatpush3.msra.mxu1 %v394_v31  ;;  %v581_v31 = vld [vmem:[#allocation2 + $0xd8] sm:$0xff] }
  0x39   : > { %2445 = vmatprep.subr.mxu1 %v393_v32  ;;  %2482 = vmatpush3.msra.mxu0 %v602_v39 }
  0x3a   : > { %2446 = vmatpush3.msra.mxu1 %v393_v32  ;;  %2483 = vmatprep.subr.mxu0 %v3098_v35 }
  0x3b   : > { %2412 = vmatmul.mubr.msk.f32.gmra.mxu0 %vm182_vm0, %v172_v27  ;;  %2447 = vmatprep.subr.mxu1 %v392_v33  ;;  %v582_v27 = vld [vmem:[#allocation2 + $0xe0] sm:$0xff] }
  0x3c   : > { %2414 = vmatprep.mubr.msk.f32.mxu0 %vm182_vm0, %v173_v28  ;;  %2448 = vmatpush3.msra.mxu1 %v392_v33 }
  0x3d   : > { %2508 = vmatprep.subr.mxu1 %v3098_v35  ;;  %2484 = vmatpush3.msra.mxu0 %v601_v40  ;;  %v579_v40 = vld [vmem:[#allocation2 + $0xc8] sm:$0xff] }
  0x3e   : > { %2485 = vmatprep.subr.mxu0 %v3098_v35 }
  0x3f   : > { %2415 = vmatmul.mubr.msk.f32.gmra.mxu0 %vm182_vm0, %v174_v29 }
  0x40   : > { %2486 = vmatpush3.msra.mxu0 %v600_v41  ;;  %2505 = vmatprep.mubr.msk.f32.mxu0 %vm3099_vm1, %v3098_v35 }
  0x41   : > { %2487 = vmatprep.subr.mxu0 %v3098_v35 }
  0x42   : > { %2488 = vmatpush3.msra.mxu0 %v599_v42 }
  0x43   : > { %2489 = vmatprep.subr.mxu0 %v3098_v35 }
  0x44   : > { %2490 = vmatpush3.msra.mxu0 %v598_v43 }
  0x45   : > { %2491 = vmatprep.subr.mxu0 %v3098_v35 }
  0x46   : > { %2492 = vmatpush3.msra.mxu0 %v597_v44  ;;  %v578_v44 = vld [vmem:[#allocation2 + $0xc0] sm:$0xff] }
  0x47   : > { %2493 = vmatprep.subr.mxu0 %v3098_v35 }
  0x48   : > { %2494 = vmatpush3.msra.mxu0 %v596_v45 }
  0x49   : > { %2495 = vmatprep.subr.mxu0 %v3098_v35 }
  0x4a   : > { %2496 = vmatpush3.msra.mxu0 %v595_v46 }
  0x4b   : > { %2497 = vmatprep.subr.mxu0 %v3098_v35 }
  0x4c   : > { %2498 = vmatpush3.msra.mxu0 %v594_v47 }
  0x4d   : > { %2499 = vmatprep.subr.mxu0 %v3098_v35 }
  0x4e   : > { %2500 = vmatpush3.msra.mxu0 %v593_v48  ;;  %v592_v48 = vld [vmem:[#allocation2 + $0x130] sm:$0xff] }
  0x4f   : > { %2501 = vmatprep.subr.mxu0 %v3098_v35 }
  0x50   : > { %2502 = vmatpush3.msra.mxu0 %v592_v48  ;;  %v929_v48 = vld [vmem:[#allocation2 + $0x2e8] sm:$0xff] }
  0x51   : > { %2503 = vmatprep.subr.mxu0 %v3098_v35 }
  0xe3   : > { %v2395_v50 = vpop.f32.mrf.mxu0 }
  0xe4   : > { %v303_v51 = vadd.f32 %v2395_v50, %v3197_v49  ;;  %v577_v50 = vld [vmem:[#allocation2 + $0xb8] sm:$0xff] }
  0xe5   : > { %v297_v52 = vpop.f32.mrf.mxu0 }
  0xe6   : > { %v298_v53 = vadd.f32 %v3197_v49, %v297_v52  ;;  %v377_v57 = vmax.f32 %v303_v51, 0.0  ;;  %v576_v51 = vld [vmem:[#allocation2 + $0xb0] sm:$0xff]  ;;  %v575_v52 = vld [vmem:[#allocation2 + $0xa8] sm:$0xff] }
  0xe7   : > { %v2398_v54 = vpop.f32.mrf.mxu0 }
  0xe8   : > { %v376_v55 = vmax.f32 %v298_v53, 0.0  ;;  %v313_v56 = vadd.f32 %v2398_v54, %v3197_v49  ;;  %v3237_v53 = vld [vmem:[#allocation2 + $0x98] ss:$0 sm:$0xff] }
  0xe9   : > { %v307_v58 = vpop.f32.mrf.mxu0 }
  0xea   : > { %2449 = vmatprep.mubr.f32.mxu1 %v376_v55  ;;  %v308_v60 = vadd.f32 %v3197_v49, %v307_v58  ;;  %v379_v61 = vmax.f32 %v313_v56, 0.0 }
  0xeb   : > { %2450 = vmatmul.mubr.f32.vlgmr.msra.gmra.mxu1 %v377_v57  ;;  %v2401_v62 = vpop.f32.mrf.mxu0 }
  0xec   : > { %v378_v0 = vmax.f32 %v308_v60, 0.0  ;;  %v323_v1 = vadd.f32 %v2401_v62, %v3197_v49  ;;  %2509 = vmatpush3.msra.mxu1 %v590_v59  ;;  %v762_v59 = vld [vmem:[#allocation2 + $0x220] sm:$0xff] }
  0xed   : > { %v317_v2 = vpop.f32.mrf.mxu0  ;;  %2510 = vmatprep.subr.mxu1 %v3098_v35  ;;  %v849_v62 = vld [vmem:[#allocation2 + $0x2a0] sm:$0xff] }
  0xee   : > { %2452 = vmatprep.mubr.f32.mxu1 %v378_v0  ;;  %v318_v4 = vadd.f32 %v3197_v49, %v317_v2  ;;  %2511 = vmatpush3.msra.mxu1 %v589_v63  ;;  %v381_v5 = vmax.f32 %v323_v1, 0.0  ;;  %v760_v63 = vld [vmem:[#allocation2 + $0x210] sm:$0xff]  ;;  %v848_v0 = vld [vmem:[#allocation2 + $0x298] sm:$0xff]  ;;  %v759_v1 = vld [vmem:[#allocation2 + $0x208] sm:$0xff] }
  0xef   : > { %2453 = vmatmul.mubr.f32.gmra.mxu1 %v379_v61  ;;  %v2404_v6 = vpop.f32.mrf.mxu0  ;;  %2512 = vmatprep.subr.mxu1 %v3098_v35  ;;  %v761_v61 = vld [vmem:[#allocation2 + $0x218] sm:$0xff]  ;;  %v847_v2 = vld [vmem:[#allocation2 + $0x290] sm:$0xff] }
  0xf0   : > { %v380_v8 = vmax.f32 %v318_v4, 0.0  ;;  %v333_v9 = vadd.f32 %v2404_v6, %v3197_v49  ;;  %2513 = vmatpush3.msra.mxu1 %v588_v3  ;;  %v758_v3 = vld [vmem:[#allocation2 + $0x200] sm:$0xff]  ;;  %v846_v4 = vld [vmem:[#allocation2 + $0x288] sm:$0xff] }
  0xf1   : > { %v327_v10 = vpop.f32.mrf.mxu0  ;;  %2514 = vmatprep.subr.mxu1 %v3098_v35  ;;  %v845_v6 = vld [vmem:[#allocation2 + $0x280] sm:$0xff] }
  0xf2   : > { %2455 = vmatprep.mubr.f32.mxu1 %v380_v8  ;;  %v328_v12 = vadd.f32 %v3197_v49, %v327_v10  ;;  %2515 = vmatpush3.msra.mxu1 %v587_v7  ;;  %v383_v13 = vmax.f32 %v333_v9, 0.0  ;;  %v756_v7 = vld [vmem:[#allocation2 + $0x1f0] sm:$0xff]  ;;  %v844_v8 = vld [vmem:[#allocation2 + $0x278] sm:$0xff]  ;;  %v755_v9 = vld [vmem:[#allocation2 + $0x1e8] sm:$0xff] }
  0xf3   : > { %2456 = vmatmul.mubr.f32.gmra.mxu1 %v381_v5  ;;  %v2407_v14 = vpop.f32.mrf.mxu0  ;;  %2516 = vmatprep.subr.mxu1 %v3098_v35  ;;  %v757_v5 = vld [vmem:[#allocation2 + $0x1f8] sm:$0xff]  ;;  %v843_v10 = vld [vmem:[#allocation2 + $0x270] sm:$0xff] }
  0xf4   : > { %v382_v16 = vmax.f32 %v328_v12, 0.0  ;;  %v343_v17 = vadd.f32 %v2407_v14, %v3197_v49  ;;  %2517 = vmatpush3.msra.mxu1 %v586_v11  ;;  %v754_v11 = vld [vmem:[#allocation2 + $0x1e0] sm:$0xff]  ;;  %v842_v12 = vld [vmem:[#allocation2 + $0x268] sm:$0xff] }
  0xf5   : > { %v337_v18 = vpop.f32.mrf.mxu0  ;;  %2518 = vmatprep.subr.mxu1 %v3098_v35  ;;  %v841_v14 = vld [vmem:[#allocation2 + $0x260] sm:$0xff] }
  0xf6   : > { %2458 = vmatprep.mubr.f32.mxu1 %v382_v16  ;;  %v338_v20 = vadd.f32 %v3197_v49, %v337_v18  ;;  %2519 = vmatpush3.msra.mxu1 %v585_v15  ;;  %v385_v21 = vmax.f32 %v343_v17, 0.0  ;;  %v752_v15 = vld [vmem:[#allocation2 + $0x1d0] sm:$0xff]  ;;  %v840_v16 = vld [vmem:[#allocation2 + $0x258] sm:$0xff]  ;;  %v751_v18 = vld [vmem:[#allocation2 + $0x1c8] sm:$0xff] }
  0xf7   : > { %2459 = vmatmul.mubr.f32.gmra.mxu1 %v383_v13  ;;  %v2410_v22 = vpop.f32.mrf.mxu0  ;;  %2520 = vmatprep.subr.mxu1 %v3098_v35  ;;  %v753_v13 = vld [vmem:[#allocation2 + $0x1d8] sm:$0xff] }
  0xf8   : > { %v384_v24 = vmax.f32 %v338_v20, 0.0  ;;  %v353_v25 = vadd.f32 %v2410_v22, %v3197_v49  ;;  %2521 = vmatpush3.msra.mxu1 %v584_v19  ;;  %v839_v19 = vld [vmem:[#allocation2 + $0x250] sm:$0xff]  ;;  %v750_v20 = vld [vmem:[#allocation2 + $0x1c0] sm:$0xff] }
  0xf9   : > { %v347_v26 = vpop.f32.mrf.mxu0  ;;  %2522 = vmatprep.subr.mxu1 %v3098_v35 }
  0xfa   : > { %2461 = vmatprep.mubr.f32.mxu1 %v384_v24  ;;  %v348_v28 = vadd.f32 %v3197_v49, %v347_v26  ;;  %2523 = vmatpush3.msra.mxu1 %v583_v23  ;;  %v387_v29 = vmax.f32 %v353_v25, 0.0  ;;  %v749_v23 = vld [vmem:[#allocation2 + $0x1b8] sm:$0xff]  ;;  %v837_v24 = vld [vmem:[#allocation2 + $0x240] sm:$0xff]  ;;  %v748_v26 = vld [vmem:[#allocation2 + $0x1b0] sm:$0xff] }
  0xfb   : > { %2462 = vmatmul.mubr.f32.gmra.mxu1 %v385_v21  ;;  %v2413_v30 = vpop.f32.mrf.mxu0  ;;  %2524 = vmatprep.subr.mxu1 %v3098_v35  ;;  %v838_v21 = vld [vmem:[#allocation2 + $0x248] sm:$0xff] }
  0xfc   : > { %v386_v32 = vmax.f32 %v348_v28, 0.0  ;;  %v363_v33 = vadd.f32 %v2413_v30, %v3197_v49  ;;  %2525 = vmatpush3.msra.mxu1 %v582_v27  ;;  %v836_v27 = vld [vmem:[#allocation2 + $0x238] sm:$0xff]  ;;  %v747_v28 = vld [vmem:[#allocation2 + $0x1a8] sm:$0xff] }
  0xfd   : > { %v357_v34 = vpop.f32.mrf.mxu0  ;;  %2526 = vmatprep.subr.mxu1 %v3098_v35 }
  0xfe   : > { %2464 = vmatprep.mubr.f32.mxu1 %v386_v32  ;;  %v358_v37 = vadd.f32 %v3197_v49, %v357_v34  ;;  %2527 = vmatpush3.msra.mxu1 %v581_v31  ;;  %v389_v38 = vmax.f32 %v363_v33, 0.0  ;;  %v834_v32 = vld [vmem:[#allocation2 + $0x228] sm:$0xff]  ;;  %v936_v33 = vld [vmem:[#allocation2 + $0x320] sm:$0xff] }
  0xff   : > { %2465 = vmatmul.mubr.f32.gmra.mxu1 %v387_v29  ;;  %v2416_v39 = vpop.f32.mrf.mxu0  ;;  %2528 = vmatprep.subr.mxu1 %v3098_v35  ;;  %v835_v29 = vld [vmem:[#allocation2 + $0x230] sm:$0xff] }
 0x100   : > { %v388_v41 = vmax.f32 %v358_v37, 0.0  ;;  %v373_v42 = vadd.f32 %v2416_v39, %v3197_v49  ;;  %2529 = vmatpush3.msra.mxu1 %v580_v36  ;;  %v935_v36 = vld [vmem:[#allocation2 + $0x318] sm:$0xff]  ;;  %v1023_v37 = vld [vmem:[#allocation2 + $0x3a0] sm:$0xff] }
 0x101   : > { %v367_v43 = vpop.f32.mrf.mxu0  ;;  %2530 = vmatprep.subr.mxu1 %v3098_v35  ;;  %v1022_v39 = vld [vmem:[#allocation2 + $0x398] sm:$0xff] }
 0x102   : > { %v368_v45 = vadd.f32 %v3197_v49, %v367_v43  ;;  %2467 = vmatprep.mubr.f32.mxu1 %v388_v41  ;;  %2531 = vmatpush3.msra.mxu1 %v579_v40  ;;  %v391_v46 = vmax.f32 %v373_v42, 0.0  ;;  %v591_v49 = vld [vmem:[#allocation2 + $0x128] sm:$0xff]  ;;  %v1021_v41 = vld [vmem:[#allocation2 + $0x390] sm:$0xff]  ;;  %v932_v42 = vld [vmem:[#allocation2 + $0x300] sm:$0xff] }
 0x103   : > { %2468 = vmatmul.mubr.f32.gmra.mxu1 %v389_v38  ;;  %2532 = vmatprep.subr.mxu1 %v3098_v35  ;;  %v934_v38 = vld [vmem:[#allocation2 + $0x310] sm:$0xff]  ;;  %v933_v40 = vld [vmem:[#allocation2 + $0x308] sm:$0xff] }
 0x104   : > { %v390_v47 = vmax.f32 %v368_v45, 0.0  ;;  %2533 = vmatpush3.msra.mxu1 %v578_v44  ;;  %2504 = vmatpush3.msra.mxu0 %v591_v49  ;;  %v1020_v43 = vld [vmem:[#allocation2 + $0x388] sm:$0xff]  ;;  %v931_v44 = vld [vmem:[#allocation2 + $0x2f8] sm:$0xff]  ;;  %v1019_v45 = vld [vmem:[#allocation2 + $0x380] sm:$0xff] }
 0x105   : > { %2534 = vmatprep.subr.mxu1 %v3098_v35  ;;  %2543 = vmatprep.subr.mxu0 %v3098_v35  ;;  %v928_v49 = vld [vmem:[#allocation2 + $0x2e0] sm:$0xff] }
 0x106   : > { %2470 = vmatprep.mubr.f32.mxu1 %v390_v47  ;;  %2535 = vmatpush3.msra.mxu1 %v577_v50  ;;  %v1018_v47 = vld [vmem:[#allocation2 + $0x378] sm:$0xff]  ;;  %v1017_v50 = vld [vmem:[#allocation2 + $0x370] sm:$0xff] }
 0x107   : > { %2471 = vmatmul.mubr.f32.gmra.mxu1 %v391_v46  ;;  %2536 = vmatprep.subr.mxu1 %v3098_v35  ;;  %v930_v46 = vld [vmem:[#allocation2 + $0x2f0] sm:$0xff] }
 0x108   : > { %2537 = vmatpush3.msra.mxu1 %v576_v51  ;;  %2540 = vmatprep.mubr.msk.f32.mxu1 %vm3099_vm1, %v3098_v35  ;;  %v1016_v51 = vld [vmem:[#allocation2 + $0x368] sm:$0xff] }
 0x109   : > { %2538 = vmatprep.subr.mxu1 %v3098_v35 }
 0x10a   : > { %2539 = vmatpush3.msra.mxu1 %v575_v52  ;;  %v927_v52 = vld [vmem:[#allocation2 + $0x2d8] sm:$0xff] }
 0x10b   : > { %2578 = vmatprep.subr.mxu1 %v3098_v35 }
 0x1ab   : > { %v2451_v54 = vpop.f32.mrf.mxu1 }
 0x1ac   : > { %v485_v55 = vadd.f32 %v2451_v54, %v3237_v53  ;;  %v1015_v54 = vld [vmem:[#allocation2 + $0x360] sm:$0xff] }
 0x1ad   : > { %v479_v56 = vpop.f32.mrf.mxu1 }
 0x1ae   : > { %v559_v57 = vmax.f32 %v485_v55, 0.0  ;;  %v480_v58 = vadd.f32 %v3237_v53, %v479_v56  ;;  %v926_v55 = vld [vmem:[#allocation2 + $0x2d0] sm:$0xff]  ;;  %v1014_v56 = vld [vmem:[#allocation2 + $0x358] sm:$0xff] }
 0x1af   : > { %v2454_v17 = vpop.f32.mrf.mxu1 }
 0x1b0   : > { %v558_v60 = vmax.f32 %v480_v58, 0.0  ;;  %2506 = vmatmul.mubr.f32.vlgmr.msra.gmra.mxu0 %v559_v57  ;;  %v495_v30 = vadd.f32 %v2454_v17, %v3237_v53  ;;  %v925_v58 = vld [vmem:[#allocation2 + $0x2c8] sm:$0xff]  ;;  %v1106_v17 = vld [vmem:[#allocation2 + $0x400] sm:$0xff] }
 0x1b1   : > { %2544 = vmatpush3.msra.mxu0 %v762_v59  ;;  %2575 = vmatprep.mubr.msk.f32.mxu0 %vm3099_vm1, %v3098_v35  ;;  %v489_v22 = vpop.f32.mrf.mxu1  ;;  %v1013_v59 = vld [vmem:[#allocation2 + $0x350] sm:$0xff] }
 0x1b2   : > { %2545 = vmatprep.subr.mxu0 %v3098_v35  ;;  %2541 = vmatmul.mubr.f32.vlgmr.msra.gmra.mxu1 %v558_v60  ;;  %v490_v25 = vadd.f32 %v3237_v53, %v489_v22  ;;  %v561_v34 = vmax.f32 %v495_v30, 0.0  ;;  %v924_v60 = vld [vmem:[#allocation2 + $0x2c0] sm:$0xff]  ;;  %v1192_v22 = vld [vmem:[#allocation2 + $0x478] sm:$0xff] }
 0x1b3   : > { %2546 = vmatpush3.msra.mxu0 %v761_v61  ;;  %2579 = vmatpush3.msra.mxu1 %v849_v62  ;;  %v2457_v57 = vpop.f32.mrf.mxu1  ;;  %v1012_v61 = vld [vmem:[#allocation2 + $0x348] sm:$0xff]  ;;  %v1188_v30 = vld [vmem:[#allocation2 + $0x458] sm:$0xff] }
 0x1b4   : > { %2547 = vmatprep.subr.mxu0 %v3098_v35  ;;  %2580 = vmatprep.subr.mxu1 %v3098_v35  ;;  %v560_v31 = vmax.f32 %v490_v25, 0.0  ;;  %v1102_v25 = vld [vmem:[#allocation2 + $0x3e0] sm:$0xff] }
 0x1b5   : > { %2548 = vmatpush3.msra.mxu0 %v760_v63  ;;  %2581 = vmatpush3.msra.mxu1 %v848_v0  ;;  %v499_v62 = vpop.f32.mrf.mxu1  ;;  %v923_v63 = vld [vmem:[#allocation2 + $0x2b8] sm:$0xff]  ;;  %v1011_v0 = vld [vmem:[#allocation2 + $0x340] sm:$0xff] }
 0x1b6   : > { %2549 = vmatprep.subr.mxu0 %v3098_v35  ;;  %2582 = vmatprep.subr.mxu1 %v3098_v35 }
 0x1b7   : > { %2550 = vmatpush3.msra.mxu0 %v759_v1  ;;  %2583 = vmatpush3.msra.mxu1 %v847_v2  ;;  %v922_v1 = vld [vmem:[#allocation2 + $0x2b0] sm:$0xff]  ;;  %v500_v2 = vadd.f32 %v3237_v53, %v499_v62  ;;  %v1366_v62 = vld [vmem:[#allocation2 + $0x578] sm:$0xff] }
 0x1b8   : > { %2551 = vmatprep.subr.mxu0 %v3098_v35  ;;  %2584 = vmatprep.subr.mxu1 %v3098_v35 }
 0x1b9   : > { %2552 = vmatpush3.msra.mxu0 %v758_v3  ;;  %2585 = vmatpush3.msra.mxu1 %v846_v4  ;;  %v1010_v3 = vld [vmem:[#allocation2 + $0x338] sm:$0xff]  ;;  %v921_v4 = vld [vmem:[#allocation2 + $0x2a8] sm:$0xff] }
 0x1ba   : > { %2553 = vmatprep.subr.mxu0 %v3098_v35  ;;  %2586 = vmatprep.subr.mxu1 %v3098_v35 }
 0x1bb   : > { %2554 = vmatpush3.msra.mxu0 %v757_v5  ;;  %2587 = vmatpush3.msra.mxu1 %v845_v6  ;;  %v1009_v5 = vld [vmem:[#allocation2 + $0x330] sm:$0xff]  ;;  %v505_v6 = vadd.f32 %v2457_v57, %v3237_v53  ;;  %v1280_v57 = vld [vmem:[#allocation2 + $0x500] sm:$0xff] }
 0x1bc   : > { %2555 = vmatprep.subr.mxu0 %v3098_v35  ;;  %2588 = vmatprep.subr.mxu1 %v3098_v35 }
 0x1bd   : > { %2556 = vmatpush3.msra.mxu0 %v756_v7  ;;  %2589 = vmatpush3.msra.mxu1 %v844_v8  ;;  %v562_v7 = vmax.f32 %v500_v2, 0.0  ;;  %v1008_v8 = vld [vmem:[#allocation2 + $0x328] sm:$0xff] }
 0x1be   : > { %2557 = vmatprep.subr.mxu0 %v3098_v35  ;;  %2590 = vmatprep.subr.mxu1 %v3098_v35  ;;  %v1364_v2 = vld [vmem:[#allocation2 + $0x568] sm:$0xff] }
 0x1bf   : > { %2558 = vmatpush3.msra.mxu0 %v755_v9  ;;  %2591 = vmatpush3.msra.mxu1 %v843_v10  ;;  %v1110_v9 = vld [vmem:[#allocation2 + $0x420] sm:$0xff]  ;;  %v563_v10 = vmax.f32 %v505_v6, 0.0  ;;  %v1362_v6 = vld [vmem:[#allocation2 + $0x558] sm:$0xff] }
 0x1c0   : > { %2559 = vmatprep.subr.mxu0 %v3098_v35  ;;  %2592 = vmatprep.subr.mxu1 %v3098_v35 }
 0x1c1   : > { %2560 = vmatpush3.msra.mxu0 %v754_v11  ;;  %2593 = vmatpush3.msra.mxu1 %v842_v12  ;;  %v1109_v11 = vld [vmem:[#allocation2 + $0x418] sm:$0xff]  ;;  %v1197_v12 = vld [vmem:[#allocation2 + $0x4a0] sm:$0xff] }
 0x1c2   : > { %2561 = vmatprep.subr.mxu0 %v3098_v35  ;;  %2594 = vmatprep.subr.mxu1 %v3098_v35 }
 0x1c3   : > { %2562 = vmatpush3.msra.mxu0 %v753_v13  ;;  %2595 = vmatpush3.msra.mxu1 %v841_v14  ;;  %v1108_v13 = vld [vmem:[#allocation2 + $0x410] sm:$0xff]  ;;  %v1196_v14 = vld [vmem:[#allocation2 + $0x498] sm:$0xff] }
 0x1c4   : > { %2563 = vmatprep.subr.mxu0 %v3098_v35  ;;  %2596 = vmatprep.subr.mxu1 %v3098_v35 }
 0x1c5   : > { %2564 = vmatpush3.msra.mxu0 %v752_v15  ;;  %2597 = vmatpush3.msra.mxu1 %v840_v16  ;;  %v1107_v15 = vld [vmem:[#allocation2 + $0x408] sm:$0xff]  ;;  %v1195_v16 = vld [vmem:[#allocation2 + $0x490] sm:$0xff] }
 0x1c6   : > { %2565 = vmatprep.subr.mxu0 %v3098_v35  ;;  %2598 = vmatprep.subr.mxu1 %v3098_v35 }
 0x1c7   : > { %2566 = vmatpush3.msra.mxu0 %v751_v18  ;;  %2599 = vmatpush3.msra.mxu1 %v839_v19  ;;  %v1194_v18 = vld [vmem:[#allocation2 + $0x488] sm:$0xff]  ;;  %v1105_v19 = vld [vmem:[#allocation2 + $0x3f8] sm:$0xff] }
 0x1c8   : > { %2567 = vmatprep.subr.mxu0 %v3098_v35  ;;  %2600 = vmatprep.subr.mxu1 %v3098_v35 }
 0x1c9   : > { %2568 = vmatpush3.msra.mxu0 %v750_v20  ;;  %2601 = vmatpush3.msra.mxu1 %v838_v21  ;;  %v1193_v20 = vld [vmem:[#allocation2 + $0x480] sm:$0xff]  ;;  %v1104_v21 = vld [vmem:[#allocation2 + $0x3f0] sm:$0xff] }
 0x1ca   : > { %2569 = vmatprep.subr.mxu0 %v3098_v35  ;;  %2602 = vmatprep.subr.mxu1 %v3098_v35 }
 0x1cb   : > { %2570 = vmatpush3.msra.mxu0 %v749_v23  ;;  %2603 = vmatpush3.msra.mxu1 %v837_v24  ;;  %v1103_v23 = vld [vmem:[#allocation2 + $0x3e8] sm:$0xff]  ;;  %v1191_v24 = vld [vmem:[#allocation2 + $0x470] sm:$0xff] }
 0x1cc   : > { %2571 = vmatprep.subr.mxu0 %v3098_v35  ;;  %2604 = vmatprep.subr.mxu1 %v3098_v35 }
 0x1cd   : > { %2572 = vmatpush3.msra.mxu0 %v748_v26  ;;  %2605 = vmatpush3.msra.mxu1 %v836_v27  ;;  %v1190_v26 = vld [vmem:[#allocation2 + $0x468] sm:$0xff]  ;;  %v1101_v27 = vld [vmem:[#allocation2 + $0x3d8] sm:$0xff] }
 0x1ce   : > { %2573 = vmatprep.subr.mxu0 %v3098_v35  ;;  %2606 = vmatprep.subr.mxu1 %v3098_v35 }
 0x1cf   : > { %2574 = vmatpush3.msra.mxu0 %v747_v28  ;;  %2607 = vmatpush3.msra.mxu1 %v835_v29  ;;  %v1189_v28 = vld [vmem:[#allocation2 + $0x460] sm:$0xff]  ;;  %v1100_v29 = vld [vmem:[#allocation2 + $0x3d0] sm:$0xff] }
 0x1d0   : > { %2576 = vmatmul.mubr.f32.vlgmr.msra.gmra.mxu0 %v560_v31  ;;  %2608 = vmatprep.subr.mxu1 %v3098_v35  ;;  %v2460_v31 = vpop.f32.mrf.mxu1 }
 0x1d1   : > { %2613 = vmatprep.subr.mxu0 %v3098_v35  ;;  %2609 = vmatpush3.msra.mxu1 %v834_v32  ;;  %v1099_v32 = vld [vmem:[#allocation2 + $0x3c8] sm:$0xff] }
 0x1d2   : > { %2610 = vmatprep.mubr.msk.f32.mxu1 %vm3099_vm1, %v3098_v35  ;;  %2614 = vmatpush3.msra.mxu0 %v936_v33  ;;  %v1187_v33 = vld [vmem:[#allocation2 + $0x450] sm:$0xff] }
 0x1d3   : > { %2611 = vmatmul.mubr.f32.vlgmr.msra.gmra.mxu1 %v561_v34  ;;  %2615 = vmatprep.subr.mxu0 %v3098_v35  ;;  %v1098_v34 = vld [vmem:[#allocation2 + $0x3c0] sm:$0xff] }
 0x1d4   : > { %2648 = vmatprep.subr.mxu1 %v3098_v35  ;;  %2616 = vmatpush3.msra.mxu0 %v935_v36  ;;  %v1186_v36 = vld [vmem:[#allocation2 + $0x448] sm:$0xff] }
 0x1d5   : > { %2649 = vmatpush3.msra.mxu1 %v1023_v37  ;;  %2617 = vmatprep.subr.mxu0 %v3098_v35  ;;  %v509_v37 = vpop.f32.mrf.mxu1 }
 0x1d6   : > { %2650 = vmatprep.subr.mxu1 %v3098_v35  ;;  %2618 = vmatpush3.msra.mxu0 %v934_v38  ;;  %v1097_v38 = vld [vmem:[#allocation2 + $0x3b8] sm:$0xff] }
 0x1d7   : > { %2651 = vmatpush3.msra.mxu1 %v1022_v39  ;;  %2619 = vmatprep.subr.mxu0 %v3098_v35  ;;  %v1185_v39 = vld [vmem:[#allocation2 + $0x440] sm:$0xff] }
 0x1d8   : > { %2652 = vmatprep.subr.mxu1 %v3098_v35  ;;  %2620 = vmatpush3.msra.mxu0 %v933_v40  ;;  %v1096_v40 = vld [vmem:[#allocation2 + $0x3b0] sm:$0xff] }
 0x1d9   : > { %2653 = vmatpush3.msra.mxu1 %v1021_v41  ;;  %2621 = vmatprep.subr.mxu0 %v3098_v35  ;;  %v510_v41 = vadd.f32 %v3237_v53, %v509_v37  ;;  %v1451_v37 = vld [vmem:[#allocation2 + $0x5e8] sm:$0xff] }
 0x1da   : > { %2654 = vmatprep.subr.mxu1 %v3098_v35  ;;  %2622 = vmatpush3.msra.mxu0 %v932_v42  ;;  %v1184_v42 = vld [vmem:[#allocation2 + $0x438] sm:$0xff] }
 0x1db   : > { %2655 = vmatpush3.msra.mxu1 %v1020_v43  ;;  %2623 = vmatprep.subr.mxu0 %v3098_v35  ;;  %v1095_v43 = vld [vmem:[#allocation2 + $0x3a8] sm:$0xff] }
 0x1dc   : > { %2656 = vmatprep.subr.mxu1 %v3098_v35  ;;  %2624 = vmatpush3.msra.mxu0 %v931_v44  ;;  %v1183_v44 = vld [vmem:[#allocation2 + $0x430] sm:$0xff] }
 0x1dd   : > { %2657 = vmatpush3.msra.mxu1 %v1019_v45  ;;  %2625 = vmatprep.subr.mxu0 %v3098_v35  ;;  %v515_v45 = vadd.f32 %v2460_v31, %v3237_v53  ;;  %v1542_v31 = vld [vmem:[#allocation2 + $0x688] sm:$0xff] }
 0x1de   : > { %2658 = vmatprep.subr.mxu1 %v3098_v35  ;;  %2626 = vmatpush3.msra.mxu0 %v930_v46  ;;  %v564_v46 = vmax.f32 %v510_v41, 0.0  ;;  %v1449_v41 = vld [vmem:[#allocation2 + $0x5d8] sm:$0xff] }
 0x1df   : > { %2659 = vmatpush3.msra.mxu1 %v1018_v47  ;;  %2627 = vmatprep.subr.mxu0 %v3098_v35  ;;  %v1182_v47 = vld [vmem:[#allocation2 + $0x428] sm:$0xff] }
 0x1e0   : > { %2660 = vmatprep.subr.mxu1 %v3098_v35  ;;  %2628 = vmatpush3.msra.mxu0 %v929_v48  ;;  %v1284_v48 = vld [vmem:[#allocation2 + $0x520] sm:$0xff] }
 0x1e1   : > { %2661 = vmatpush3.msra.mxu1 %v1017_v50  ;;  %2629 = vmatprep.subr.mxu0 %v3098_v35  ;;  %v565_v50 = vmax.f32 %v515_v45, 0.0 }
 0x1e2   : > { %2662 = vmatprep.subr.mxu1 %v3098_v35  ;;  %2630 = vmatpush3.msra.mxu0 %v928_v49  ;;  %v1283_v49 = vld [vmem:[#allocation2 + $0x518] sm:$0xff] }
 0x1e3   : > { %2663 = vmatpush3.msra.mxu1 %v1016_v51  ;;  %2631 = vmatprep.subr.mxu0 %v3098_v35  ;;  %v1371_v51 = vld [vmem:[#allocation2 + $0x5a0] sm:$0xff] }
 0x1e4   : > { %2664 = vmatprep.subr.mxu1 %v3098_v35  ;;  %2632 = vmatpush3.msra.mxu0 %v927_v52  ;;  %v1282_v52 = vld [vmem:[#allocation2 + $0x510] sm:$0xff] }
 0x1e5   : > { %2665 = vmatpush3.msra.mxu1 %v1015_v54  ;;  %2633 = vmatprep.subr.mxu0 %v3098_v35  ;;  %v1370_v54 = vld [vmem:[#allocation2 + $0x598] sm:$0xff] }
 0x1e6   : > { %2666 = vmatprep.subr.mxu1 %v3098_v35  ;;  %2634 = vmatpush3.msra.mxu0 %v926_v55  ;;  %v1281_v55 = vld [vmem:[#allocation2 + $0x508] sm:$0xff] }
 0x1e7   : > { %2667 = vmatpush3.msra.mxu1 %v1014_v56  ;;  %2635 = vmatprep.subr.mxu0 %v3098_v35  ;;  %v1369_v56 = vld [vmem:[#allocation2 + $0x590] sm:$0xff] }
 0x1e8   : > { %2668 = vmatprep.subr.mxu1 %v3098_v35  ;;  %2636 = vmatpush3.msra.mxu0 %v925_v58  ;;  %v1368_v58 = vld [vmem:[#allocation2 + $0x588] sm:$0xff] }
 0x1e9   : > { %2669 = vmatpush3.msra.mxu1 %v1013_v59  ;;  %2637 = vmatprep.subr.mxu0 %v3098_v35  ;;  %v1279_v59 = vld [vmem:[#allocation2 + $0x4f8] sm:$0xff] }
 0x1ea   : > { %2670 = vmatprep.subr.mxu1 %v3098_v35  ;;  %2638 = vmatpush3.msra.mxu0 %v924_v60  ;;  %v1367_v60 = vld [vmem:[#allocation2 + $0x580] sm:$0xff] }
 0x1eb   : > { %2671 = vmatpush3.msra.mxu1 %v1012_v61  ;;  %2639 = vmatprep.subr.mxu0 %v3098_v35  ;;  %v1278_v61 = vld [vmem:[#allocation2 + $0x4f0] sm:$0xff] }
 0x1ec   : > { %2672 = vmatprep.subr.mxu1 %v3098_v35  ;;  %2640 = vmatpush3.msra.mxu0 %v923_v63  ;;  %v1277_v63 = vld [vmem:[#allocation2 + $0x4e8] sm:$0xff] }
 0x1ed   : > { %2673 = vmatpush3.msra.mxu1 %v1011_v0  ;;  %2641 = vmatprep.subr.mxu0 %v3098_v35  ;;  %v1365_v0 = vld [vmem:[#allocation2 + $0x570] sm:$0xff] }
 0x1ee   : > { %2674 = vmatprep.subr.mxu1 %v3098_v35  ;;  %2642 = vmatpush3.msra.mxu0 %v922_v1  ;;  %v1276_v1 = vld [vmem:[#allocation2 + $0x4e0] sm:$0xff] }
 0x1ef   : > { %2675 = vmatpush3.msra.mxu1 %v1010_v3  ;;  %2643 = vmatprep.subr.mxu0 %v3098_v35  ;;  %v1275_v3 = vld [vmem:[#allocation2 + $0x4d8] sm:$0xff] }
 0x1f0   : > { %2676 = vmatprep.subr.mxu1 %v3098_v35  ;;  %2644 = vmatpush3.msra.mxu0 %v921_v4  ;;  %v1363_v4 = vld [vmem:[#allocation2 + $0x560] sm:$0xff] }
 0x1f1   : > { %2645 = vmatprep.mubr.msk.f32.mxu0 %vm3099_vm1, %v3098_v35  ;;  %2677 = vmatpush3.msra.mxu1 %v1009_v5  ;;  %v1274_v5 = vld [vmem:[#allocation2 + $0x4d0] sm:$0xff] }
 0x1f2   : > { %2646 = vmatmul.mubr.f32.vlgmr.msra.gmra.mxu0 %v562_v7  ;;  %2678 = vmatprep.subr.mxu1 %v3098_v35  ;;  %v2463_v7 = vpop.f32.mrf.mxu1 }
 0x1f3   : > { %2683 = vmatprep.subr.mxu0 %v3098_v35  ;;  %2679 = vmatpush3.msra.mxu1 %v1008_v8  ;;  %v1273_v8 = vld [vmem:[#allocation2 + $0x4c8] sm:$0xff] }
 0x1f4   : > { %2680 = vmatprep.mubr.msk.f32.mxu1 %vm3099_vm1, %v3098_v35  ;;  %2684 = vmatpush3.msra.mxu0 %v1110_v9  ;;  %v1361_v9 = vld [vmem:[#allocation2 + $0x550] sm:$0xff] }
 0x1f5   : > { %2681 = vmatmul.mubr.f32.vlgmr.msra.gmra.mxu1 %v563_v10  ;;  %2685 = vmatprep.subr.mxu0 %v3098_v35  ;;  %v1272_v10 = vld [vmem:[#allocation2 + $0x4c0] sm:$0xff] }
 0x1f6   : > { %2718 = vmatprep.subr.mxu1 %v3098_v35  ;;  %2686 = vmatpush3.msra.mxu0 %v1109_v11  ;;  %v1360_v11 = vld [vmem:[#allocation2 + $0x548] sm:$0xff] }
 0x1f7   : > { %2719 = vmatpush3.msra.mxu1 %v1197_v12  ;;  %2687 = vmatprep.subr.mxu0 %v3098_v35  ;;  %v519_v12 = vpop.f32.mrf.mxu1 }
 0x1f8   : > { %2720 = vmatprep.subr.mxu1 %v3098_v35  ;;  %2688 = vmatpush3.msra.mxu0 %v1108_v13  ;;  %v1271_v13 = vld [vmem:[#allocation2 + $0x4b8] sm:$0xff] }
 0x1f9   : > { %2721 = vmatpush3.msra.mxu1 %v1196_v14  ;;  %2689 = vmatprep.subr.mxu0 %v3098_v35  ;;  %v1359_v14 = vld [vmem:[#allocation2 + $0x540] sm:$0xff]  ;;  %v2466_v45 = vpop.f32.mrf.mxu1 }
 0x1fa   : > { %2722 = vmatprep.subr.mxu1 %v3098_v35  ;;  %2690 = vmatpush3.msra.mxu0 %v1107_v15  ;;  %v1270_v15 = vld [vmem:[#allocation2 + $0x4b0] sm:$0xff] }
 0x1fb   : > { %2723 = vmatpush3.msra.mxu1 %v1195_v16  ;;  %2691 = vmatprep.subr.mxu0 %v3098_v35  ;;  %v520_v16 = vadd.f32 %v3237_v53, %v519_v12  ;;  %v1714_v12 = vld [vmem:[#allocation2 + $0x778] sm:$0xff] }
 0x1fc   : > { %2724 = vmatprep.subr.mxu1 %v3098_v35  ;;  %2692 = vmatpush3.msra.mxu0 %v1106_v17  ;;  %v1358_v17 = vld [vmem:[#allocation2 + $0x538] sm:$0xff] }
 0x1fd   : > { %2725 = vmatpush3.msra.mxu1 %v1194_v18  ;;  %2693 = vmatprep.subr.mxu0 %v3098_v35  ;;  %v1269_v18 = vld [vmem:[#allocation2 + $0x4a8] sm:$0xff] }
 0x1fe   : > { %2726 = vmatprep.subr.mxu1 %v3098_v35  ;;  %2694 = vmatpush3.msra.mxu0 %v1105_v19  ;;  %v1357_v19 = vld [vmem:[#allocation2 + $0x530] sm:$0xff] }
 0x1ff   : > { %2727 = vmatpush3.msra.mxu1 %v1193_v20  ;;  %2695 = vmatprep.subr.mxu0 %v3098_v35  ;;  %v525_v20 = vadd.f32 %v2463_v7, %v3237_v53  ;;  %v1457_v53 = vld [vmem:[#allocation2 + $0x618] sm:$0xff]  ;;  %v1628_v7 = vld [vmem:[#allocation2 + $0x700] sm:$0xff] }
 0x200   : > { %2728 = vmatprep.subr.mxu1 %v3098_v35  ;;  %2696 = vmatpush3.msra.mxu0 %v1104_v21  ;;  %v566_v21 = vmax.f32 %v520_v16, 0.0  ;;  %v1624_v16 = vld [vmem:[#allocation2 + $0x6e0] sm:$0xff] }
 0x201   : > { %2729 = vmatpush3.msra.mxu1 %v1192_v22  ;;  %2697 = vmatprep.subr.mxu0 %v3098_v35  ;;  %v1356_v22 = vld [vmem:[#allocation2 + $0x528] sm:$0xff] }
 0x202   : > { %2730 = vmatprep.subr.mxu1 %v3098_v35  ;;  %2698 = vmatpush3.msra.mxu0 %v1103_v23  ;;  %v1458_v23 = vld [vmem:[#allocation2 + $0x620] sm:$0xff] }
 0x203   : > { %2731 = vmatpush3.msra.mxu1 %v1191_v24  ;;  %2699 = vmatprep.subr.mxu0 %v3098_v35  ;;  %v567_v24 = vmax.f32 %v525_v20, 0.0  ;;  %v1711_v20 = vld [vmem:[#allocation2 + $0x760] sm:$0xff] }
 0x204   : > { %2732 = vmatprep.subr.mxu1 %v3098_v35  ;;  %2700 = vmatpush3.msra.mxu0 %v1102_v25  ;;  %v1545_v25 = vld [vmem:[#allocation2 + $0x6a0] sm:$0xff] }
 0x205   : > { %2733 = vmatpush3.msra.mxu1 %v1190_v26  ;;  %2701 = vmatprep.subr.mxu0 %v3098_v35  ;;  %v1456_v26 = vld [vmem:[#allocation2 + $0x610] sm:$0xff] }
 0x206   : > { %2734 = vmatprep.subr.mxu1 %v3098_v35  ;;  %2702 = vmatpush3.msra.mxu0 %v1101_v27  ;;  %v1544_v27 = vld [vmem:[#allocation2 + $0x698] sm:$0xff] }
 0x207   : > { %2735 = vmatpush3.msra.mxu1 %v1189_v28  ;;  %2703 = vmatprep.subr.mxu0 %v3098_v35  ;;  %v1455_v28 = vld [vmem:[#allocation2 + $0x608] sm:$0xff] }
 0x208   : > { %2736 = vmatprep.subr.mxu1 %v3098_v35  ;;  %2704 = vmatpush3.msra.mxu0 %v1100_v29  ;;  %v1543_v29 = vld [vmem:[#allocation2 + $0x690] sm:$0xff] }
 0x209   : > { %2737 = vmatpush3.msra.mxu1 %v1188_v30  ;;  %2705 = vmatprep.subr.mxu0 %v3098_v35  ;;  %v1454_v30 = vld [vmem:[#allocation2 + $0x600] sm:$0xff] }
 0x20a   : > { %2738 = vmatprep.subr.mxu1 %v3098_v35  ;;  %2706 = vmatpush3.msra.mxu0 %v1099_v32  ;;  %v1453_v32 = vld [vmem:[#allocation2 + $0x5f8] sm:$0xff] }
 0x20b   : > { %2739 = vmatpush3.msra.mxu1 %v1187_v33  ;;  %2707 = vmatprep.subr.mxu0 %v3098_v35  ;;  %v1541_v33 = vld [vmem:[#allocation2 + $0x680] sm:$0xff] }
 0x20c   : > { %2740 = vmatprep.subr.mxu1 %v3098_v35  ;;  %2708 = vmatpush3.msra.mxu0 %v1098_v34  ;;  %v1452_v34 = vld [vmem:[#allocation2 + $0x5f0] sm:$0xff] }
 0x20d   : > { %2741 = vmatpush3.msra.mxu1 %v1186_v36  ;;  %2709 = vmatprep.subr.mxu0 %v3098_v35  ;;  %v1540_v36 = vld [vmem:[#allocation2 + $0x678] sm:$0xff] }
 0x20e   : > { %2742 = vmatprep.subr.mxu1 %v3098_v35  ;;  %2710 = vmatpush3.msra.mxu0 %v1097_v38  ;;  %v1539_v38 = vld [vmem:[#allocation2 + $0x670] sm:$0xff] }
 0x20f   : > { %2743 = vmatpush3.msra.mxu1 %v1185_v39  ;;  %2711 = vmatprep.subr.mxu0 %v3098_v35  ;;  %v1450_v39 = vld [vmem:[#allocation2 + $0x5e0] sm:$0xff] }
 0x210   : > { %2744 = vmatprep.subr.mxu1 %v3098_v35  ;;  %2712 = vmatpush3.msra.mxu0 %v1096_v40  ;;  %v1538_v40 = vld [vmem:[#allocation2 + $0x668] sm:$0xff] }
 0x211   : > { %2745 = vmatpush3.msra.mxu1 %v1184_v42  ;;  %2713 = vmatprep.subr.mxu0 %v3098_v35  ;;  %v1537_v42 = vld [vmem:[#allocation2 + $0x660] sm:$0xff] }
 0x212   : > { %2746 = vmatprep.subr.mxu1 %v3098_v35  ;;  %2714 = vmatpush3.msra.mxu0 %v1095_v43  ;;  %v1448_v43 = vld [vmem:[#allocation2 + $0x5d0] sm:$0xff] }
 0x213   : > { %2715 = vmatprep.mubr.msk.f32.mxu0 %vm3099_vm1, %v3098_v35  ;;  %2747 = vmatpush3.msra.mxu1 %v1183_v44  ;;  %v1536_v44 = vld [vmem:[#allocation2 + $0x658] sm:$0xff] }
 0x214   : > { %2716 = vmatmul.mubr.f32.vlgmr.msra.gmra.mxu0 %v564_v46  ;;  %2748 = vmatprep.subr.mxu1 %v3098_v35  ;;  %v1447_v46 = vld [vmem:[#allocation2 + $0x5c8] sm:$0xff] }
 0x215   : > { %2753 = vmatprep.subr.mxu0 %v3098_v35  ;;  %2749 = vmatpush3.msra.mxu1 %v1182_v47  ;;  %v1535_v47 = vld [vmem:[#allocation2 + $0x650] sm:$0xff] }
 0x216   : > { %2750 = vmatprep.mubr.msk.f32.mxu1 %vm3099_vm1, %v3098_v35  ;;  %2754 = vmatpush3.msra.mxu0 %v1284_v48  ;;  %v1446_v48 = vld [vmem:[#allocation2 + $0x5c0] sm:$0xff] }
 0x217   : > { %2751 = vmatmul.mubr.f32.vlgmr.msra.gmra.mxu1 %v565_v50  ;;  %2755 = vmatprep.subr.mxu0 %v3098_v35  ;;  %v1534_v50 = vld [vmem:[#allocation2 + $0x648] sm:$0xff] }
 0x218   : > { %2788 = vmatprep.subr.mxu1 %v3098_v35  ;;  %2756 = vmatpush3.msra.mxu0 %v1283_v49  ;;  %v529_v49 = vpop.f32.mrf.mxu1 }
 0x219   : > { %2789 = vmatpush3.msra.mxu1 %v1371_v51  ;;  %2757 = vmatprep.subr.mxu0 %v3098_v35  ;;  %v1445_v51 = vld [vmem:[#allocation2 + $0x5b8] sm:$0xff] }
 0x21a   : > { %2790 = vmatprep.subr.mxu1 %v3098_v35  ;;  %2758 = vmatpush3.msra.mxu0 %v1282_v52  ;;  %v1533_v52 = vld [vmem:[#allocation2 + $0x640] sm:$0xff] }
 0x21b   : > { %2791 = vmatpush3.msra.mxu1 %v1370_v54  ;;  %2759 = vmatprep.subr.mxu0 %v3098_v35  ;;  %v1444_v54 = vld [vmem:[#allocation2 + $0x5b0] sm:$0xff] }
 0x21c   : > { %2792 = vmatprep.subr.mxu1 %v3098_v35  ;;  %2760 = vmatpush3.msra.mxu0 %v1281_v55  ;;  %v3417_v55 = vld [vmem:[#allocation2 + $0x98] ss:$0 sm:$0xff] }
 0x21d   : > { %2793 = vmatpush3.msra.mxu1 %v1369_v56  ;;  %2761 = vmatprep.subr.mxu0 %v3098_v35  ;;  %v530_v56 = vadd.f32 %v3417_v55, %v529_v49  ;;  %v1803_v49 = vld [vmem:[#allocation2 + $0x808] sm:$0xff] }
 0x21e   : > { %2794 = vmatprep.subr.mxu1 %v3098_v35  ;;  %2762 = vmatpush3.msra.mxu0 %v1280_v57  ;;  %v1532_v57 = vld [vmem:[#allocation2 + $0x638] sm:$0xff] }
 0x21f   : > { %2795 = vmatpush3.msra.mxu1 %v1368_v58  ;;  %2763 = vmatprep.subr.mxu0 %v3098_v35  ;;  %v1443_v58 = vld [vmem:[#allocation2 + $0x5a8] sm:$0xff] }
 0x220   : > { %2796 = vmatprep.subr.mxu1 %v3098_v35  ;;  %2764 = vmatpush3.msra.mxu0 %v1279_v59  ;;  %v1531_v59 = vld [vmem:[#allocation2 + $0x630] sm:$0xff] }
 0x221   : > { %2797 = vmatpush3.msra.mxu1 %v1367_v60  ;;  %2765 = vmatprep.subr.mxu0 %v3098_v35  ;;  %v535_v60 = vadd.f32 %v3417_v55, %v2466_v45 }
 0x222   : > { %2798 = vmatprep.subr.mxu1 %v3098_v35  ;;  %2766 = vmatpush3.msra.mxu0 %v1278_v61  ;;  %v568_v61 = vmax.f32 %v530_v56, 0.0  ;;  %v1801_v56 = vld [vmem:[#allocation2 + $0x7f8] sm:$0xff] }
 0x223   : > { %2799 = vmatpush3.msra.mxu1 %v1366_v62  ;;  %2767 = vmatprep.subr.mxu0 %v3098_v35  ;;  %v1530_v62 = vld [vmem:[#allocation2 + $0x628] sm:$0xff] }
 0x224   : > { %2800 = vmatprep.subr.mxu1 %v3098_v35  ;;  %2768 = vmatpush3.msra.mxu0 %v1277_v63  ;;  %v1632_v63 = vld [vmem:[#allocation2 + $0x720] sm:$0xff] }
 0x225   : > { %2801 = vmatpush3.msra.mxu1 %v1365_v0  ;;  %2769 = vmatprep.subr.mxu0 %v3098_v35  ;;  %v569_v0 = vmax.f32 %v535_v60, 0.0  ;;  %v1799_v60 = vld [vmem:[#allocation2 + $0x7e8] sm:$0xff] }
 0x226   : > { %2802 = vmatprep.subr.mxu1 %v3098_v35  ;;  %2770 = vmatpush3.msra.mxu0 %v1276_v1  ;;  %v1631_v1 = vld [vmem:[#allocation2 + $0x718] sm:$0xff] }
 0x227   : > { %2803 = vmatpush3.msra.mxu1 %v1364_v2  ;;  %2771 = vmatprep.subr.mxu0 %v3098_v35  ;;  %v1719_v2 = vld [vmem:[#allocation2 + $0x7a0] sm:$0xff] }
 0x228   : > { %2804 = vmatprep.subr.mxu1 %v3098_v35  ;;  %2772 = vmatpush3.msra.mxu0 %v1275_v3  ;;  %v1630_v3 = vld [vmem:[#allocation2 + $0x710] sm:$0xff] }
 0x229   : > { %2805 = vmatpush3.msra.mxu1 %v1363_v4  ;;  %2773 = vmatprep.subr.mxu0 %v3098_v35  ;;  %v1718_v4 = vld [vmem:[#allocation2 + $0x798] sm:$0xff] }
 0x22a   : > { %2806 = vmatprep.subr.mxu1 %v3098_v35  ;;  %2774 = vmatpush3.msra.mxu0 %v1274_v5  ;;  %v1629_v5 = vld [vmem:[#allocation2 + $0x708] sm:$0xff] }
 0x22b   : > { %2807 = vmatpush3.msra.mxu1 %v1362_v6  ;;  %2775 = vmatprep.subr.mxu0 %v3098_v35  ;;  %v1717_v6 = vld [vmem:[#allocation2 + $0x790] sm:$0xff] }
 0x22c   : > { %2808 = vmatprep.subr.mxu1 %v3098_v35  ;;  %2776 = vmatpush3.msra.mxu0 %v1273_v8  ;;  %v1716_v8 = vld [vmem:[#allocation2 + $0x788] sm:$0xff] }
 0x22d   : > { %2809 = vmatpush3.msra.mxu1 %v1361_v9  ;;  %2777 = vmatprep.subr.mxu0 %v3098_v35  ;;  %v1627_v9 = vld [vmem:[#allocation2 + $0x6f8] sm:$0xff] }
 0x22e   : > { %2810 = vmatprep.subr.mxu1 %v3098_v35  ;;  %2778 = vmatpush3.msra.mxu0 %v1272_v10  ;;  %v1715_v10 = vld [vmem:[#allocation2 + $0x780] sm:$0xff] }
 0x22f   : > { %2811 = vmatpush3.msra.mxu1 %v1360_v11  ;;  %2779 = vmatprep.subr.mxu0 %v3098_v35  ;;  %v1626_v11 = vld [vmem:[#allocation2 + $0x6f0] sm:$0xff] }
 0x230   : > { %2812 = vmatprep.subr.mxu1 %v3098_v35  ;;  %2780 = vmatpush3.msra.mxu0 %v1271_v13  ;;  %v3442_v13 = vpop.f32.mrf.mxu1 }
 0x231   : > { %2813 = vmatpush3.msra.mxu1 %v1359_v14  ;;  %2781 = vmatprep.subr.mxu0 %v3098_v35  ;;  %v1625_v14 = vld [vmem:[#allocation2 + $0x6e8] sm:$0xff] }
 0x232   : > { %2814 = vmatprep.subr.mxu1 %v3098_v35  ;;  %2782 = vmatpush3.msra.mxu0 %v1270_v15  ;;  %v1713_v15 = vld [vmem:[#allocation2 + $0x770] sm:$0xff] }
 0x233   : > { %2815 = vmatpush3.msra.mxu1 %v1358_v17  ;;  %2783 = vmatprep.subr.mxu0 %v3098_v35  ;;  %v1712_v17 = vld [vmem:[#allocation2 + $0x768] sm:$0xff] }
 0x234   : > { %2816 = vmatprep.subr.mxu1 %v3098_v35  ;;  %2784 = vmatpush3.msra.mxu0 %v1269_v18  ;;  %v539_v18 = vpop.f32.mrf.mxu1 }
 0x235   : > { %2785 = vmatprep.mubr.msk.f32.mxu0 %vm3099_vm1, %v3098_v35  ;;  %2817 = vmatpush3.msra.mxu1 %v1357_v19  ;;  %v1623_v19 = vld [vmem:[#allocation2 + $0x6d8] sm:$0xff] }
 0x236   : > { %2786 = vmatmul.mubr.f32.vlgmr.msra.gmra.mxu0 %v566_v21  ;;  %2818 = vmatprep.subr.mxu1 %v3098_v35  ;;  %v1622_v21 = vld [vmem:[#allocation2 + $0x6d0] sm:$0xff] }
 0x237   : > { %2823 = vmatprep.subr.mxu0 %v3098_v35  ;;  %2819 = vmatpush3.msra.mxu1 %v1356_v22  ;;  %v1710_v22 = vld [vmem:[#allocation2 + $0x758] sm:$0xff] }
 0x238   : > { %2820 = vmatprep.mubr.msk.f32.mxu1 %vm3099_vm1, %v3098_v35  ;;  %2824 = vmatpush3.msra.mxu0 %v1458_v23  ;;  %v3452_v23 = vpop.f32.mrf.mxu1 }
 0x239   : > { %2821 = vmatmul.mubr.f32.vlgmr.msra.gmra.mxu1 %v567_v24  ;;  %2825 = vmatprep.subr.mxu0 %v3098_v35  ;;  %v1621_v24 = vld [vmem:[#allocation2 + $0x6c8] sm:$0xff] }
 0x23a   : > { %2858 = vmatprep.subr.mxu1 %v3098_v35  ;;  %2826 = vmatpush3.msra.mxu0 %v1457_v53  ;;  %v1709_v53 = vld [vmem:[#allocation2 + $0x750] sm:$0xff] }
 0x23b   : > { %2859 = vmatpush3.msra.mxu1 %v1545_v25  ;;  %2827 = vmatprep.subr.mxu0 %v3098_v35  ;;  %v1620_v25 = vld [vmem:[#allocation2 + $0x6c0] sm:$0xff] }
 0x23c   : > { %2860 = vmatprep.subr.mxu1 %v3098_v35  ;;  %2828 = vmatpush3.msra.mxu0 %v1456_v26  ;;  %v1708_v26 = vld [vmem:[#allocation2 + $0x748] sm:$0xff] }
 0x23d   : > { %2861 = vmatpush3.msra.mxu1 %v1544_v27  ;;  %2829 = vmatprep.subr.mxu0 %v3098_v35  ;;  %v3458_v27 = vpop.f32.mrf.mxu1 }
 0x23e   : > { %2862 = vmatprep.subr.mxu1 %v3098_v35  ;;  %2830 = vmatpush3.msra.mxu0 %v1455_v28 }
 0x23f   : > { %2863 = vmatpush3.msra.mxu1 %v1543_v29  ;;  %2831 = vmatprep.subr.mxu0 %v3098_v35  ;;  %v1619_v29 = vld [vmem:[#allocation2 + $0x6b8] sm:$0xff] }
 0x240   : > { %2864 = vmatprep.subr.mxu1 %v3098_v35  ;;  %2832 = vmatpush3.msra.mxu0 %v1454_v30  ;;  %v1707_v30 = vld [vmem:[#allocation2 + $0x740] sm:$0xff] }
 0x241   : > { %2865 = vmatpush3.msra.mxu1 %v1542_v31  ;;  %2833 = vmatprep.subr.mxu0 %v3098_v35 }
 0x242   : > { %2866 = vmatprep.subr.mxu1 %v3098_v35  ;;  %2834 = vmatpush3.msra.mxu0 %v1453_v32 }
 0x243   : > { %2867 = vmatpush3.msra.mxu1 %v1541_v33  ;;  %2835 = vmatprep.subr.mxu0 %v3098_v35  ;;  %v1618_v33 = vld [vmem:[#allocation2 + $0x6b0] sm:$0xff] }
 0x244   : > { %2868 = vmatprep.subr.mxu1 %v3098_v35  ;;  %2836 = vmatpush3.msra.mxu0 %v1452_v34 }
 0x245   : > { %2869 = vmatpush3.msra.mxu1 %v1540_v36  ;;  %2837 = vmatprep.subr.mxu0 %v3098_v35  ;;  %v540_v36 = vadd.f32 %v3417_v55, %v539_v18  ;;  %v1880_v18 = vld [vmem:[#allocation2 + $0x838] sm:$0xff] }
 0x246   : > { %2870 = vmatprep.subr.mxu1 %v3098_v35  ;;  %2838 = vmatpush3.msra.mxu0 %v1451_v37  ;;  %v1706_v37 = vld [vmem:[#allocation2 + $0x738] sm:$0xff] }
 0x247   : > { %2871 = vmatpush3.msra.mxu1 %v1539_v38  ;;  %2839 = vmatprep.subr.mxu0 %v3098_v35 }
 0x248   : > { %2872 = vmatprep.subr.mxu1 %v3098_v35  ;;  %2840 = vmatpush3.msra.mxu0 %v1450_v39  ;;  %v1617_v39 = vld [vmem:[#allocation2 + $0x6a8] sm:$0xff] }
 0x249   : > { %2873 = vmatpush3.msra.mxu1 %v1538_v40  ;;  %2841 = vmatprep.subr.mxu0 %v3098_v35  ;;  %v1705_v40 = vld [vmem:[#allocation2 + $0x730] sm:$0xff] }
 0x24a   : > { %2874 = vmatprep.subr.mxu1 %v3098_v35  ;;  %2842 = vmatpush3.msra.mxu0 %v1449_v41  ;;  %v545_v41 = vadd.f32 %v3417_v55, %v3442_v13  ;;  %v1881_v13 = vld [vmem:[#allocation2 + $0x840] sm:$0xff] }
 0x24b   : > { %2875 = vmatpush3.msra.mxu1 %v1537_v42  ;;  %2843 = vmatprep.subr.mxu0 %v3098_v35  ;;  %v570_v42 = vmax.f32 %v540_v36, 0.0 }
 0x24c   : > { %2876 = vmatprep.subr.mxu1 %v3098_v35  ;;  %2844 = vmatpush3.msra.mxu0 %v1448_v43  ;;  %v1704_v43 = vld [vmem:[#allocation2 + $0x728] sm:$0xff]  ;;  %v571_v45 = vmax.f32 %v545_v41, 0.0 }
 0x24d   : > { %2877 = vmatpush3.msra.mxu1 %v1536_v44  ;;  %2845 = vmatprep.subr.mxu0 %v3098_v35  ;;  %v1806_v44 = vld [vmem:[#allocation2 + $0x820] sm:$0xff] }
 0x24e   : > { %2878 = vmatprep.subr.mxu1 %v3098_v35  ;;  %2846 = vmatpush3.msra.mxu0 %v1447_v46  ;;  %v1805_v46 = vld [vmem:[#allocation2 + $0x818] sm:$0xff] }
 0x24f   : > { %2879 = vmatpush3.msra.mxu1 %v1535_v47  ;;  %2847 = vmatprep.subr.mxu0 %v3098_v35  ;;  %v1893_v47 = vld [vmem:[#allocation2 + $0x8a0] sm:$0xff] }
 0x250   : > { %2880 = vmatprep.subr.mxu1 %v3098_v35  ;;  %2848 = vmatpush3.msra.mxu0 %v1446_v48  ;;  %v1804_v48 = vld [vmem:[#allocation2 + $0x810] sm:$0xff] }
 0x251   : > { %2881 = vmatpush3.msra.mxu1 %v1534_v50  ;;  %2849 = vmatprep.subr.mxu0 %v3098_v35  ;;  %v1892_v50 = vld [vmem:[#allocation2 + $0x898] sm:$0xff] }
 0x252   : > { %2882 = vmatprep.subr.mxu1 %v3098_v35  ;;  %2850 = vmatpush3.msra.mxu0 %v1445_v51  ;;  %v1891_v51 = vld [vmem:[#allocation2 + $0x890] sm:$0xff] }
 0x253   : > { %2883 = vmatpush3.msra.mxu1 %v1533_v52  ;;  %2851 = vmatprep.subr.mxu0 %v3098_v35  ;;  %v1802_v52 = vld [vmem:[#allocation2 + $0x800] sm:$0xff] }
 0x254   : > { %2884 = vmatprep.subr.mxu1 %v3098_v35  ;;  %2852 = vmatpush3.msra.mxu0 %v1444_v54  ;;  %v1890_v54 = vld [vmem:[#allocation2 + $0x888] sm:$0xff] }
 0x255   : > { %2885 = vmatpush3.msra.mxu1 %v1532_v57  ;;  %2853 = vmatprep.subr.mxu0 %v3098_v35  ;;  %v1889_v57 = vld [vmem:[#allocation2 + $0x880] sm:$0xff] }
 0x256   : > { %2886 = vmatprep.subr.mxu1 %v3098_v35  ;;  %2854 = vmatpush3.msra.mxu0 %v1443_v58  ;;  %v1800_v58 = vld [vmem:[#allocation2 + $0x7f0] sm:$0xff] }
 0x257   : > { %2855 = vmatprep.mubr.msk.f32.mxu0 %vm3099_vm1, %v3098_v35  ;;  %2887 = vmatpush3.msra.mxu1 %v1531_v59  ;;  %v1888_v59 = vld [vmem:[#allocation2 + $0x878] sm:$0xff] }
 0x258   : > { %2856 = vmatmul.mubr.f32.vlgmr.msra.gmra.mxu0 %v568_v61  ;;  %2888 = vmatprep.subr.mxu1 %v3098_v35  ;;  %v1887_v61 = vld [vmem:[#allocation2 + $0x870] sm:$0xff] }
 0x259   : > { %2893 = vmatprep.subr.mxu0 %v3098_v35  ;;  %2889 = vmatpush3.msra.mxu1 %v1530_v62  ;;  %v1798_v62 = vld [vmem:[#allocation2 + $0x7e0] sm:$0xff] }
 0x25a   : > { %2890 = vmatprep.mubr.msk.f32.mxu1 %vm3099_vm1, %v3098_v35  ;;  %2894 = vmatpush3.msra.mxu0 %v1632_v63  ;;  %v1886_v63 = vld [vmem:[#allocation2 + $0x868] sm:$0xff] }
 0x25b   : > { %2891 = vmatmul.mubr.f32.vlgmr.msra.gmra.mxu1 %v569_v0  ;;  %2895 = vmatprep.subr.mxu0 %v3098_v35  ;;  %v1797_v0 = vld [vmem:[#allocation2 + $0x7d8] sm:$0xff] }
 0x25c   : > { %2928 = vmatprep.subr.mxu1 %v3098_v35  ;;  %2896 = vmatpush3.msra.mxu0 %v1631_v1  ;;  %v1885_v1 = vld [vmem:[#allocation2 + $0x860] sm:$0xff] }
 0x25d   : > { %2929 = vmatpush3.msra.mxu1 %v1719_v2  ;;  %2897 = vmatprep.subr.mxu0 %v3098_v35  ;;  %v1796_v2 = vld [vmem:[#allocation2 + $0x7d0] sm:$0xff] }
 0x25e   : > { %2930 = vmatprep.subr.mxu1 %v3098_v35  ;;  %2898 = vmatpush3.msra.mxu0 %v1630_v3  ;;  %v1884_v3 = vld [vmem:[#allocation2 + $0x858] sm:$0xff] }
 0x25f   : > { %2931 = vmatpush3.msra.mxu1 %v1718_v4  ;;  %2899 = vmatprep.subr.mxu0 %v3098_v35  ;;  %v1795_v4 = vld [vmem:[#allocation2 + $0x7c8] sm:$0xff] }
 0x260   : > { %2932 = vmatprep.subr.mxu1 %v3098_v35  ;;  %2900 = vmatpush3.msra.mxu0 %v1629_v5  ;;  %v1883_v5 = vld [vmem:[#allocation2 + $0x850] sm:$0xff] }
 0x261   : > { %2933 = vmatpush3.msra.mxu1 %v1717_v6  ;;  %2901 = vmatprep.subr.mxu0 %v3098_v35 }
 0x262   : > { %2934 = vmatprep.subr.mxu1 %v3098_v35  ;;  %2902 = vmatpush3.msra.mxu0 %v1628_v7  ;;  %v1794_v7 = vld [vmem:[#allocation2 + $0x7c0] sm:$0xff] }
 0x263   : > { %2935 = vmatpush3.msra.mxu1 %v1716_v8  ;;  %2903 = vmatprep.subr.mxu0 %v3098_v35 }
 0x264   : > { %2936 = vmatprep.subr.mxu1 %v3098_v35  ;;  %2904 = vmatpush3.msra.mxu0 %v1627_v9  ;;  %v1882_v9 = vld [vmem:[#allocation2 + $0x848] sm:$0xff] }
 0x265   : > { %2937 = vmatpush3.msra.mxu1 %v1715_v10  ;;  %2905 = vmatprep.subr.mxu0 %v3098_v35 }
 0x266   : > { %2938 = vmatprep.subr.mxu1 %v3098_v35  ;;  %2906 = vmatpush3.msra.mxu0 %v1626_v11  ;;  %v1793_v11 = vld [vmem:[#allocation2 + $0x7b8] sm:$0xff] }
 0x267   : > { %2939 = vmatpush3.msra.mxu1 %v1714_v12  ;;  %2907 = vmatprep.subr.mxu0 %v3098_v35 }
 0x268   : > { %2940 = vmatprep.subr.mxu1 %v3098_v35  ;;  %2908 = vmatpush3.msra.mxu0 %v1625_v14 }
 0x269   : > { %2941 = vmatpush3.msra.mxu1 %v1713_v15  ;;  %2909 = vmatprep.subr.mxu0 %v3098_v35  ;;  %v1792_v15 = vld [vmem:[#allocation2 + $0x7b0] sm:$0xff] }
 0x26a   : > { %2942 = vmatprep.subr.mxu1 %v3098_v35  ;;  %2910 = vmatpush3.msra.mxu0 %v1624_v16 }
 0x26b   : > { %2943 = vmatpush3.msra.mxu1 %v1712_v17  ;;  %2911 = vmatprep.subr.mxu0 %v3098_v35  ;;  %v550_v17 = vadd.f32 %v3417_v55, %v3458_v27 }
 0x26c   : > { %2944 = vmatprep.subr.mxu1 %v3098_v35  ;;  %2912 = vmatpush3.msra.mxu0 %v1623_v19  ;;  %v1791_v19 = vld [vmem:[#allocation2 + $0x7a8] sm:$0xff] }
 0x26d   : > { %2945 = vmatpush3.msra.mxu1 %v1711_v20  ;;  %2913 = vmatprep.subr.mxu0 %v3098_v35  ;;  %v555_v20 = vadd.f32 %v3417_v55, %v3452_v23 }
 0x26e   : > { %2946 = vmatprep.subr.mxu1 %v3098_v35  ;;  %2914 = vmatpush3.msra.mxu0 %v1622_v21  ;;  %v1879_v21 = vld [vmem:[#allocation2 + $0x830] sm:$0xff] }
 0x26f   : > { %2947 = vmatpush3.msra.mxu1 %v1710_v22  ;;  %2915 = vmatprep.subr.mxu0 %v3098_v35  ;;  %v572_v22 = vmax.f32 %v550_v17, 0.0 }
 0x270   : > { %2948 = vmatprep.subr.mxu1 %v3098_v35  ;;  %2916 = vmatpush3.msra.mxu0 %v1621_v24  ;;  %v673_v28 = vpop.f32.mrf.mxu0  ;;  %v1878_v24 = vld [vmem:[#allocation2 + $0x828] sm:$0xff] }
 0x271   : > { %2949 = vmatpush3.msra.mxu1 %v1709_v53  ;;  %2917 = vmatprep.subr.mxu0 %v3098_v35  ;;  %v573_v53 = vmax.f32 %v555_v20, 0.0 }
 0x272   : > { %2950 = vmatprep.subr.mxu1 %v3098_v35  ;;  %2918 = vmatpush3.msra.mxu0 %v1620_v25  ;;  %v2507_v31 = vpop.f32.mrf.mxu0  ;;  %v743_v32 = vpop.f32.mrf.mxu1 }
 0x273   : > { %2951 = vmatpush3.msra.mxu1 %v1708_v26  ;;  %2919 = vmatprep.subr.mxu0 %v3098_v35  ;;  %v3463_v34 = vadd.f32 %v743_v32, %v673_v28 }
 0x274   : > { %2952 = vmatprep.subr.mxu1 %v3098_v35  ;;  %2920 = vmatpush3.msra.mxu0 %v1619_v29  ;;  %v2542_v38 = vpop.f32.mrf.mxu1 }
 0x275   : > { %2953 = vmatpush3.msra.mxu1 %v1707_v30  ;;  %2921 = vmatprep.subr.mxu0 %v3098_v35 }
 0x276   : > { %2954 = vmatprep.subr.mxu1 %v3098_v35  ;;  %2922 = vmatpush3.msra.mxu0 %v1618_v33 }
 0x277   : > { %2955 = vmatpush3.msra.mxu1 %v1706_v37  ;;  %2923 = vmatprep.subr.mxu0 %v3098_v35 }
 0x278   : > { %2956 = vmatprep.subr.mxu1 %v3098_v35  ;;  %2924 = vmatpush3.msra.mxu0 %v1617_v39 }
 0x279   : > { %2925 = vmatprep.mubr.msk.f32.mxu0 %vm3099_vm1, %v3098_v35  ;;  %2957 = vmatpush3.msra.mxu1 %v1705_v40 }
 0x27a   : > { %2926 = vmatmul.mubr.f32.vlgmr.msra.gmra.mxu0 %v570_v42  ;;  %2958 = vmatprep.subr.mxu1 %v3098_v35 }
 0x27b   : > { %2963 = vmatprep.subr.mxu0 %v3098_v35  ;;  %2959 = vmatpush3.msra.mxu1 %v1704_v43 }
 0x27c   : > { %2960 = vmatprep.mubr.msk.f32.mxu1 %vm3099_vm1, %v3098_v35  ;;  %2964 = vmatpush3.msra.mxu0 %v1806_v44 }
 0x27d   : > { %2961 = vmatmul.mubr.f32.vlgmr.msra.gmra.mxu1 %v571_v45  ;;  %2965 = vmatprep.subr.mxu0 %v3098_v35 }
 0x27e   : > { %2998 = vmatprep.subr.mxu1 %v3098_v35  ;;  %2966 = vmatpush3.msra.mxu0 %v1805_v46 }
 0x27f   : > { %2999 = vmatpush3.msra.mxu1 %v1893_v47  ;;  %2967 = vmatprep.subr.mxu0 %v3098_v35 }
 0x280   : > { %3000 = vmatprep.subr.mxu1 %v3098_v35  ;;  %2968 = vmatpush3.msra.mxu0 %v1804_v48 }
 0x281   : > { %3001 = vmatpush3.msra.mxu1 %v1892_v50  ;;  %2969 = vmatprep.subr.mxu0 %v3098_v35 }
 0x282   : > { %3002 = vmatprep.subr.mxu1 %v3098_v35  ;;  %2970 = vmatpush3.msra.mxu0 %v1803_v49 }
 0x283   : > { %3003 = vmatpush3.msra.mxu1 %v1891_v51  ;;  %2971 = vmatprep.subr.mxu0 %v3098_v35 }
 0x284   : > { %3004 = vmatprep.subr.mxu1 %v3098_v35  ;;  %2972 = vmatpush3.msra.mxu0 %v1802_v52 }
 0x285   : > { %3005 = vmatpush3.msra.mxu1 %v1890_v54  ;;  %2973 = vmatprep.subr.mxu0 %v3098_v35 }
 0x286   : > { %3006 = vmatprep.subr.mxu1 %v3098_v35  ;;  %2974 = vmatpush3.msra.mxu0 %v1801_v56 }
 0x287   : > { %3007 = vmatpush3.msra.mxu1 %v1889_v57  ;;  %2975 = vmatprep.subr.mxu0 %v3098_v35 }
 0x288   : > { %3008 = vmatprep.subr.mxu1 %v3098_v35  ;;  %2976 = vmatpush3.msra.mxu0 %v1800_v58  ;;  %v2064_v58 = vld [vmem:[#allocation2 + $0xa0] ss:$0 sm:$0xff] }
 0x289   : > { %3009 = vmatpush3.msra.mxu1 %v1888_v59  ;;  %2977 = vmatprep.subr.mxu0 %v3098_v35 }
 0x28a   : > { %3010 = vmatprep.subr.mxu1 %v3098_v35  ;;  %2978 = vmatpush3.msra.mxu0 %v1799_v60 }
 0x28b   : > { %3011 = vmatpush3.msra.mxu1 %v1887_v61  ;;  %2979 = vmatprep.subr.mxu0 %v3098_v35 }
 0x28c   : > { %3012 = vmatprep.subr.mxu1 %v3098_v35  ;;  %2980 = vmatpush3.msra.mxu0 %v1798_v62 }
 0x28d   : > { %3013 = vmatpush3.msra.mxu1 %v1886_v63  ;;  %2981 = vmatprep.subr.mxu0 %v3098_v35 }
 0x28e   : > { %3014 = vmatprep.subr.mxu1 %v3098_v35  ;;  %2982 = vmatpush3.msra.mxu0 %v1797_v0 }
 0x28f   : > { %3015 = vmatpush3.msra.mxu1 %v1885_v1  ;;  %2983 = vmatprep.subr.mxu0 %v3098_v35 }
 0x290   : > { %3016 = vmatprep.subr.mxu1 %v3098_v35  ;;  %2984 = vmatpush3.msra.mxu0 %v1796_v2  ;;  %v829_v6 = vpop.f32.mrf.mxu0 }
 0x291   : > { %3017 = vmatpush3.msra.mxu1 %v1884_v3  ;;  %2985 = vmatprep.subr.mxu0 %v3098_v35  ;;  %v833_v8 = vadd.f32 %v829_v6, %v3463_v34 }
 0x292   : > { %3018 = vmatprep.subr.mxu1 %v3098_v35  ;;  %2986 = vmatpush3.msra.mxu0 %v1795_v4  ;;  %v2577_v10 = vpop.f32.mrf.mxu0 }
 0x293   : > { %3019 = vmatpush3.msra.mxu1 %v1883_v5  ;;  %2987 = vmatprep.subr.mxu0 %v3098_v35  ;;  %v916_v12 = vpop.f32.mrf.mxu1 }
 0x294   : > { %3020 = vmatprep.subr.mxu1 %v3098_v35  ;;  %2988 = vmatpush3.msra.mxu0 %v1794_v7  ;;  %v920_v14 = vadd.f32 %v916_v12, %v833_v8 }
 0x295   : > { %3021 = vmatpush3.msra.mxu1 %v1882_v9  ;;  %2989 = vmatprep.subr.mxu0 %v3098_v35  ;;  %v2612_v16 = vpop.f32.mrf.mxu1 }
 0x296   : > { %3022 = vmatprep.subr.mxu1 %v3098_v35  ;;  %2990 = vmatpush3.msra.mxu0 %v1793_v11 }
 0x297   : > { %3023 = vmatpush3.msra.mxu1 %v1881_v13  ;;  %2991 = vmatprep.subr.mxu0 %v3098_v35 }
 0x298   : > { %3024 = vmatprep.subr.mxu1 %v3098_v35  ;;  %2992 = vmatpush3.msra.mxu0 %v1792_v15 }
 0x299   : > { %3025 = vmatpush3.msra.mxu1 %v1880_v18  ;;  %2993 = vmatprep.subr.mxu0 %v3098_v35 }
 0x29a   : > { %3026 = vmatprep.subr.mxu1 %v3098_v35  ;;  %2994 = vmatpush3.msra.mxu0 %v1791_v19 }
 0x29b   : > { %2995 = vmatprep.mubr.msk.f32.mxu0 %vm3099_vm1, %v3098_v35  ;;  %3027 = vmatpush3.msra.mxu1 %v1879_v21 }
 0x29c   : > { %2996 = vmatmul.mubr.f32.vlgmr.msra.gmra.mxu0 %v572_v22  ;;  %3028 = vmatprep.subr.mxu1 %v3098_v35 }
 0x29d   : > { %3029 = vmatpush3.msra.mxu1 %v1878_v24  ;;  %3030 = vmatprep.mubr.msk.f32.mxu1 %vm3099_vm1, %v3098_v35 }
 0x29e   : > { %3031 = vmatmul.mubr.f32.vlgmr.msra.gmra.mxu1 %v573_v53 }
 0x2b2   : > { %v1003_v55 = vpop.f32.mrf.mxu0 }
 0x2b3   : > { %v1007_v23 = vadd.f32 %v1003_v55, %v920_v14 }
 0x2b4   : > { %v2647_v25 = vpop.f32.mrf.mxu0 }
 0x2b5   : > { %v1090_v26 = vpop.f32.mrf.mxu1 }
 0x2b6   : > { %v1094_v27 = vadd.f32 %v1090_v26, %v1007_v23 }
 0x2b7   : > { %v2682_v28 = vpop.f32.mrf.mxu1 }
 0x2d4   : > { %v1177_v29 = vpop.f32.mrf.mxu0 }
 0x2d5   : > { %v1181_v30 = vadd.f32 %v1177_v29, %v1094_v27 }
 0x2d6   : > { %v2717_v31 = vpop.f32.mrf.mxu0 }
 0x2d7   : > { %v1264_v32 = vpop.f32.mrf.mxu1 }
 0x2d8   : > { %v1268_v33 = vadd.f32 %v1264_v32, %v1181_v30 }
 0x2d9   : > { %v2752_v34 = vpop.f32.mrf.mxu1 }
 0x2f6   : > { %v1351_v36 = vpop.f32.mrf.mxu0 }
 0x2f7   : > { %v1355_v37 = vadd.f32 %v1351_v36, %v1268_v33 }
 0x2f8   : > { %v2787_v38 = vpop.f32.mrf.mxu0 }
 0x2f9   : > { %v1438_v39 = vpop.f32.mrf.mxu1 }
 0x2fa   : > { %v1442_v35 = vadd.f32 %v1438_v39, %v1355_v37 }
 0x2fb   : > { %v2822_v40 = vpop.f32.mrf.mxu1 }
 0x318   : > { %v1525_v41 = vpop.f32.mrf.mxu0 }
 0x319   : > { %v1529_v50 = vadd.f32 %v1525_v41, %v1442_v35 }
 0x31a   : > { %v2857_v42 = vpop.f32.mrf.mxu0 }
 0x31b   : > { %v1612_v43 = vpop.f32.mrf.mxu1 }
 0x31c   : > { %v1616_v49 = vadd.f32 %v1612_v43, %v1529_v50 }
 0x31d   : > { %v2892_v44 = vpop.f32.mrf.mxu1 }
 0x33a   : > { %v1699_v45 = vpop.f32.mrf.mxu0 }
 0x33b   : > { %v1703_v51 = vadd.f32 %v1699_v45, %v1616_v49 }
 0x33c   : > { %v2927_v46 = vpop.f32.mrf.mxu0 }
 0x33d   : > { %v1786_v47 = vpop.f32.mrf.mxu1 }
 0x33e   : > { %v1790_v52 = vadd.f32 %v1786_v47, %v1703_v51 }
 0x33f   : > { %v2962_v48 = vpop.f32.mrf.mxu1 }
 0x35c   : > { %v1873_v54 = vpop.f32.mrf.mxu0 }
 0x35d   : > { %v1877_v56 = vadd.f32 %v1873_v54, %v1790_v52 }
 0x35e   : > { %v2997_v57 = vpop.f32.mrf.mxu0  ;;  %v1960_v59 = vpop.f32.mrf.mxu1 }
 0x35f   : > { %v1964_v60 = vadd.f32 %v1960_v59, %v1877_v56 }
 0x360   : > { %v3032_v61 = vpop.f32.mrf.mxu1 }
 0x361   : > { %v1969_v62 = vadd.f32 %v2064_v58, %v1964_v60 }
 0x363   : > { %1970 = vst [vmem:[%s158_s27] sm:$0xff] %v1969_v62 }
 0x364 PF: > { %s13_s9 = sadd.s32 1, %s3093_s9  }
 0x365   : > { %p10_p2 = scmp.ge.s32.totalorder %s13_s9, 5  }
 0x367   :  { %12 = sbr.rel (!%p10_p2) target bundleno = 1 (0x1), region = 63 }
 0x36c   :  { %1990 = vsyncpa [#allocation3], 1 }
 0x36d   :  { %1992 = vsyncpa [#allocation3 + $0x1], 1 }

</bundles_post_ra>
